<compile_context>
chip_gen: v7x
topology: tpu7x:2x2x1
jax: 0.10.0
libtpu: 0.0.40
codegen_flags: <defaults>
</compile_context>

<pallas_src>
import functools
import math

import jax
import jax.numpy as jnp
from jax.experimental import pallas as pl
from jax.experimental.pallas import tpu as pltpu


# ------------------------------ helpers ------------------------------------ #
def _round_up(v, m=128):
    return ((v + m - 1) // m) * m


def _pad2d(arr, rows, cols, dtype):
    arr = arr.astype(dtype)
    return jnp.pad(arr, ((0, rows - arr.shape[0]), (0, cols - arr.shape[1])))


# ----------------------------- Pallas kernel ------------------------------- #
def mgcl_prune_kernel(
    a_ref, x_ref,
    w1_ref, b1_ref, w2_ref, b2_ref,          # online encoder weights
    w1t_ref, b1t_ref, w2t_ref, b2t_ref,      # pruned (target) encoder weights
    wp1_ref, bp1_ref, wp2_ref, bp2_ref,      # predictor weights
    h1_ref, h2_ref, pred_ref,
    *, k_online, k_target, swap_layer,
):
    a = a_ref[...]        # bf16, loaded once, reused by both encoder passes
    x = x_ref[...]        # bf16

    def mm(lhs, rhs):
        # bf16 MXU operands, f32 accumulation.
        return jnp.dot(lhs.astype(jnp.bfloat16), rhs.astype(jnp.bfloat16),
                       preferred_element_type=jnp.float32)

    # ---- layer-1 propagation (A^j X), shared by both passes when swapped ----
    if swap_layer[0]:
        max_k1 = max(int(k_online[0]), int(k_target[0]))
        props = [x]
        cur = x
        for _ in range(max_k1):
            cur = mm(a, cur)
            props.append(cur)
        l1_in_online = props[int(k_online[0])]
        l1_in_target = props[int(k_target[0])]
    else:
        l1_in_online = x
        l1_in_target = x

    def gcn_layer(h, w, b, k, swap, relu, pre_propagated=False):
        # act( A^k @ (h @ w) + b )  ==  act( (A^k @ h) @ w + b )
        if swap:                      # propagate at the narrower feature width
            if not pre_propagated:
                for _ in range(int(k)):
                    h = mm(a, h)
            h = mm(h, w)
        else:
            h = mm(h, w)
            for _ in range(int(k)):
                h = mm(a, h)
        h = h + b                     # f32 epilogue, once per layer
        if relu:
            h = jnp.maximum(h, 0.0)
        return h

    def encoder(l1_in, w1, b1, w2, b2, ks):
        h = gcn_layer(l1_in, w1, b1, ks[0], swap_layer[0], relu=True,
                      pre_propagated=swap_layer[0])
        return gcn_layer(h, w2, b2, ks[1], swap_layer[1], relu=False)

    # online pass -> h1
    h1 = encoder(l1_in_online, w1_ref[...], b1_ref[...],
                 w2_ref[...], b2_ref[...], k_online)
    # pruned target pass -> h2 (same A_hat / shared A^k X, already in VMEM)
    h2 = encoder(l1_in_target, w1t_ref[...], b1t_ref[...],
                 w2t_ref[...], b2t_ref[...], k_target)

    # predictor: Linear -> ELU -> Linear on h1
    z = mm(h1, wp1_ref[...]) + bp1_ref[...]
    z = jnp.where(z > 0.0, z, jnp.exp(jnp.minimum(z, 0.0)) - 1.0)   # ELU(a=1)
    pred = mm(z, wp2_ref[...]) + bp2_ref[...]

    h1_ref[...] = h1.astype(h1_ref.dtype)
    h2_ref[...] = h2.astype(h2_ref.dtype)
    pred_ref[...] = pred.astype(pred_ref.dtype)


# ------------------------------ JAX wrapper --------------------------------- #
def mgcl_prune_forward(params, x, a_hat, online_k, target_k, *,
                       prune_rate=0.3, stop_grad=True):
    """MGCLPrune.forward (eval): returns (h1, h2, h1_pred)."""
    n, f_in = x.shape
    hidden = params["w1"].shape[1]
    out_dim = params["w2"].shape[1]
    pred_dim = params["wp1"].shape[1]

    np_ = _round_up(n)
    fin_p, hid_p = _round_up(f_in), _round_up(hidden)
    out_p, pred_p = _round_up(out_dim), _round_up(pred_dim)

    def as_k(k):
        return tuple(int(v) for v in k) if isinstance(k, (list, tuple)) \
            else (int(k), int(k))
    k_online, k_target = as_k(online_k), as_k(target_k)

    # ---- magnitude pruning of the target-pass weights (get_target_encoder) ----
    w1, b1, w2, b2 = params["w1"], params["b1"], params["w2"], params["b2"]
    vec = jnp.concatenate([jnp.abs(w1).ravel(), jnp.abs(w2).ravel(),
                           jnp.abs(b1).ravel(), jnp.abs(b2).ravel()])
    n_total = int(vec.shape[0])
    n_prune = int(math.ceil(prune_rate * n_total))
    thresh = jnp.sort(vec)[min(n_prune, n_total - 1)]

    def prune(w):
        return jnp.where(jnp.abs(w) > thresh, w, 0.0)

    bf16, f32 = jnp.bfloat16, jnp.float32
    a_p = _pad2d(a_hat, np_, np_, bf16)
    x_p = _pad2d(x, np_, fin_p, bf16)
    w1_p = _pad2d(w1, fin_p, hid_p, bf16)
    b1_p = _pad2d(b1, 1, hid_p, f32)
    w2_p = _pad2d(w2, hid_p, out_p, bf16)
    b2_p = _pad2d(b2, 1, out_p, f32)
    w1t_p = _pad2d(prune(w1), fin_p, hid_p, bf16)
    b1t_p = _pad2d(prune(b1), 1, hid_p, f32)
    w2t_p = _pad2d(prune(w2), hid_p, out_p, bf16)
    b2t_p = _pad2d(prune(b2), 1, out_p, f32)
    wp1_p = _pad2d(params["wp1"], out_p, pred_p, bf16)
    bp1_p = _pad2d(params["bp1"], 1, pred_p, f32)
    wp2_p = _pad2d(params["wp2"], pred_p, out_p, bf16)
    bp2_p = _pad2d(params["bp2"], 1, out_p, f32)

    inputs = (a_p, x_p, w1_p, b1_p, w2_p, b2_p,
              w1t_p, b1t_p, w2t_p, b2t_p, wp1_p, bp1_p, wp2_p, bp2_p)

    # propagate at the narrower real width per layer
    swap_layer = (f_in < hidden, hidden < out_dim)

    # advisory cost estimate (padded sizes, shared layer-1 propagation)
    flops = 0
    if swap_layer[0]:
        max_k1 = max(k_online[0], k_target[0])
        flops += 2 * max_k1 * np_ * np_ * fin_p          # shared A^j X
        flops += 2 * 2 * np_ * fin_p * hid_p             # transform, both passes
    else:
        for ks in (k_online, k_target):
            flops += 2 * np_ * fin_p * hid_p + 2 * ks[0] * np_ * np_ * hid_p
    for ks in (k_online, k_target):
        if swap_layer[1]:
            flops += 2 * ks[1] * np_ * np_ * hid_p + 2 * np_ * hid_p * out_p
        else:
            flops += 2 * np_ * hid_p * out_p + 2 * ks[1] * np_ * np_ * out_p
    flops += 2 * np_ * out_p * pred_p + 2 * np_ * pred_p * out_p
    bytes_accessed = sum(int(v.size) * v.dtype.itemsize for v in inputs)
    bytes_accessed += 3 * np_ * out_p * 4

    out_sds = jax.ShapeDtypeStruct((np_, out_p), f32)
    kernel = functools.partial(mgcl_prune_kernel,
                               k_online=k_online, k_target=k_target,
                               swap_layer=swap_layer)

    h1_p, h2_p, pred_pad = pl.pallas_call(
        kernel,
        out_shape=(out_sds, out_sds, out_sds),
        grid=(1,),
        in_specs=[pl.BlockSpec(v.shape, lambda i: (0, 0)) for v in inputs],
        out_specs=[pl.BlockSpec((np_, out_p), lambda i: (0, 0))] * 3,
        compiler_params=pltpu.CompilerParams(
            dimension_semantics=("arbitrary",)),
        cost_estimate=pl.CostEstimate(
            flops=int(flops),
            transcendentals=int(np_ * pred_p),
            bytes_accessed=int(bytes_accessed)),
    )(*inputs)

    h1 = h1_p[:n, :out_dim]
    h2 = h2_p[:n, :out_dim]
    if stop_grad:
        h2 = jax.lax.stop_gradient(h2)
    h1_pred = pred_pad[:n, :out_dim]
    return h1, h2, h1_pred


# ------------------------------ graph glue ---------------------------------- #
def build_normalized_adjacency(edge_index, num_nodes):
    """Dense D^{-1/2}(A + I)D^{-1/2} from a (2, E) edge_index."""
    src, dst = edge_index[0], edge_index[1]
    a = jnp.zeros((num_nodes, num_nodes), jnp.float32)
    a = a.at[src, dst].set(1.0)
    a = jnp.minimum(a + jnp.eye(num_nodes, dtype=jnp.float32), 1.0)
    deg = a.sum(axis=1)
    d_inv_sqrt = 1.0 / jnp.sqrt(jnp.maximum(deg, 1.0))
    return a * d_inv_sqrt[:, None] * d_inv_sqrt[None, :]


def init_params(key, in_ch, hidden_ch, out_ch, pred_ch):
    k1, k2, k3, k4 = jax.random.split(key, 4)

    def glorot(k, fan_in, fan_out):
        limit = jnp.sqrt(6.0 / (fan_in + fan_out))
        return jax.random.uniform(k, (fan_in, fan_out), jnp.float32,
                                  -limit, limit)

    return {
        "w1": glorot(k1, in_ch, hidden_ch),
        "b1": jnp.zeros((1, hidden_ch), jnp.float32),
        "w2": glorot(k2, hidden_ch, out_ch),
        "b2": jnp.zeros((1, out_ch), jnp.float32),
        "wp1": glorot(k3, out_ch, pred_ch),
        "bp1": jnp.zeros((1, pred_ch), jnp.float32),
        "wp2": glorot(k4, pred_ch, out_ch),
        "bp2": jnp.zeros((1, out_ch), jnp.float32),
    }


# -------------------------------- driver ------------------------------------ #
if __name__ == "__main__":
    N = 16
    IN_CH = 8
    HIDDEN_CH = 32
    OUT_CH = 16
    PRED_CH = 8
    ONLINE_K = (2, 2)      # propagation steps per layer (online pass)
    TARGET_K = (1, 1)      # propagation steps per layer (pruned target pass)

    key = jax.random.PRNGKey(0)
    k_x, k_p = jax.random.split(key)

    x = jax.random.normal(k_x, (N, IN_CH), jnp.float32)

    # deterministic bidirectional ring graph: edge_index (2, 32)
    src = jnp.arange(N, dtype=jnp.int32)
    dst = (src + 1) % N
    edge_index = jnp.stack(
        [jnp.concatenate([src, dst]), jnp.concatenate([dst, src])], axis=0)

    a_hat = build_normalized_adjacency(edge_index, N)
    params = init_params(k_p, IN_CH, HIDDEN_CH, OUT_CH, PRED_CH)

    h1, h2, h1_pred = mgcl_prune_forward(
        params, x, a_hat, ONLINE_K, TARGET_K,
        prune_rate=0.3, stop_grad=True)
    jax.block_until_ready((h1, h2, h1_pred))

    assert h1.shape == (N, OUT_CH), h1.shape
    assert h2.shape == (N, OUT_CH), h2.shape
    assert h1_pred.shape == (N, OUT_CH), h1_pred.shape
    print("KERNEL_OK")
</pallas_src>

<mosaic_0001>
module attributes {stable_mosaic.version = 11 : i64} {
  func.func @mgcl_prune_kernel(%arg0: i32, %arg1: memref<128x128xbf16, #tpu.memory_space<vmem>>, %arg2: memref<128x128xbf16, #tpu.memory_space<vmem>>, %arg3: memref<128x128xbf16, #tpu.memory_space<vmem>>, %arg4: memref<1x128xf32, #tpu.memory_space<vmem>>, %arg5: memref<128x128xbf16, #tpu.memory_space<vmem>>, %arg6: memref<1x128xf32, #tpu.memory_space<vmem>>, %arg7: memref<128x128xbf16, #tpu.memory_space<vmem>>, %arg8: memref<1x128xf32, #tpu.memory_space<vmem>>, %arg9: memref<128x128xbf16, #tpu.memory_space<vmem>>, %arg10: memref<1x128xf32, #tpu.memory_space<vmem>>, %arg11: memref<128x128xbf16, #tpu.memory_space<vmem>>, %arg12: memref<1x128xf32, #tpu.memory_space<vmem>>, %arg13: memref<128x128xbf16, #tpu.memory_space<vmem>>, %arg14: memref<1x128xf32, #tpu.memory_space<vmem>>, %arg15: memref<128x128xf32, #tpu.memory_space<vmem>>, %arg16: memref<128x128xf32, #tpu.memory_space<vmem>>, %arg17: memref<128x128xf32, #tpu.memory_space<vmem>>) attributes {dimension_semantics = [#tpu.dimension_semantics<arbitrary>], iteration_bounds = array<i64: 1>, scalar_prefetch = 0 : i64, scratch_operands = 0 : i64, tpu.core_type = #tpu.core_type<tc>, window_params = [{pipeline_mode = #tpu.pipeline_mode<synchronous>, transform_indices = @transform_0, window_bounds = array<i64: 128, 128>}, {pipeline_mode = #tpu.pipeline_mode<synchronous>, transform_indices = @transform_1, window_bounds = array<i64: 128, 128>}, {pipeline_mode = #tpu.pipeline_mode<synchronous>, transform_indices = @transform_2, window_bounds = array<i64: 128, 128>}, {pipeline_mode = #tpu.pipeline_mode<synchronous>, transform_indices = @transform_3, window_bounds = array<i64: 1, 128>}, {pipeline_mode = #tpu.pipeline_mode<synchronous>, transform_indices = @transform_4, window_bounds = array<i64: 128, 128>}, {pipeline_mode = #tpu.pipeline_mode<synchronous>, transform_indices = @transform_5, window_bounds = array<i64: 1, 128>}, {pipeline_mode = #tpu.pipeline_mode<synchronous>, transform_indices = @transform_6, window_bounds = array<i64: 128, 128>}, {pipeline_mode = #tpu.pipeline_mode<synchronous>, transform_indices = @transform_7, window_bounds = array<i64: 1, 128>}, {pipeline_mode = #tpu.pipeline_mode<synchronous>, transform_indices = @transform_8, window_bounds = array<i64: 128, 128>}, {pipeline_mode = #tpu.pipeline_mode<synchronous>, transform_indices = @transform_9, window_bounds = array<i64: 1, 128>}, {pipeline_mode = #tpu.pipeline_mode<synchronous>, transform_indices = @transform_10, window_bounds = array<i64: 128, 128>}, {pipeline_mode = #tpu.pipeline_mode<synchronous>, transform_indices = @transform_11, window_bounds = array<i64: 1, 128>}, {pipeline_mode = #tpu.pipeline_mode<synchronous>, transform_indices = @transform_12, window_bounds = array<i64: 128, 128>}, {pipeline_mode = #tpu.pipeline_mode<synchronous>, transform_indices = @transform_13, window_bounds = array<i64: 1, 128>}, {pipeline_mode = #tpu.pipeline_mode<synchronous>, transform_indices = @transform_14, window_bounds = array<i64: 128, 128>}, {pipeline_mode = #tpu.pipeline_mode<synchronous>, transform_indices = @transform_15, window_bounds = array<i64: 128, 128>}, {pipeline_mode = #tpu.pipeline_mode<synchronous>, transform_indices = @transform_16, window_bounds = array<i64: 128, 128>}]} {
    %c0 = arith.constant 0 : index
    %c0_0 = arith.constant 0 : index
    %0 = vector.load %arg1[%c0, %c0_0] : memref<128x128xbf16, #tpu.memory_space<vmem>>, vector<128x128xbf16>
    %c0_1 = arith.constant 0 : index
    %c0_2 = arith.constant 0 : index
    %1 = vector.load %arg2[%c0_1, %c0_2] : memref<128x128xbf16, #tpu.memory_space<vmem>>, vector<128x128xbf16>
    %cst = arith.constant dense<0.000000e+00> : vector<128x128xf32>
    %2 = tpu.matmul %0, %1, %cst {dimension_numbers = #tpu.dot_dimension_numbers<[1], [0], [0], [1], [0, 0, 1, 1], [], []>} : vector<128x128xbf16>, vector<128x128xbf16>, vector<128x128xf32> -> vector<128x128xf32>
    %3 = arith.truncf %2 : vector<128x128xf32> to vector<128x128xbf16>
    %cst_3 = arith.constant dense<0.000000e+00> : vector<128x128xf32>
    %4 = tpu.matmul %0, %3, %cst_3 {dimension_numbers = #tpu.dot_dimension_numbers<[1], [0], [0], [1], [0, 0, 1, 1], [], []>} : vector<128x128xbf16>, vector<128x128xbf16>, vector<128x128xf32> -> vector<128x128xf32>
    %c0_4 = arith.constant 0 : index
    %c0_5 = arith.constant 0 : index
    %5 = vector.load %arg3[%c0_4, %c0_5] : memref<128x128xbf16, #tpu.memory_space<vmem>>, vector<128x128xbf16>
    %c0_6 = arith.constant 0 : index
    %c0_7 = arith.constant 0 : index
    %6 = vector.load %arg4[%c0_6, %c0_7] : memref<1x128xf32, #tpu.memory_space<vmem>>, vector<1x128xf32>
    %c0_8 = arith.constant 0 : index
    %c0_9 = arith.constant 0 : index
    %7 = vector.load %arg5[%c0_8, %c0_9] : memref<128x128xbf16, #tpu.memory_space<vmem>>, vector<128x128xbf16>
    %c0_10 = arith.constant 0 : index
    %c0_11 = arith.constant 0 : index
    %8 = vector.load %arg6[%c0_10, %c0_11] : memref<1x128xf32, #tpu.memory_space<vmem>>, vector<1x128xf32>
    %9 = arith.truncf %4 : vector<128x128xf32> to vector<128x128xbf16>
    %cst_12 = arith.constant dense<0.000000e+00> : vector<128x128xf32>
    %10 = tpu.matmul %9, %5, %cst_12 {dimension_numbers = #tpu.dot_dimension_numbers<[1], [0], [0], [1], [0, 0, 1, 1], [], []>} : vector<128x128xbf16>, vector<128x128xbf16>, vector<128x128xf32> -> vector<128x128xf32>
    %11 = vector.broadcast %6 : vector<1x128xf32> to vector<128x128xf32>
    %12 = arith.addf %10, %11 : vector<128x128xf32>
    %cst_13 = arith.constant 0.000000e+00 : f32
    %13 = vector.broadcast %cst_13 : f32 to vector<128x128xf32>
    %14 = arith.maximumf %12, %13 : vector<128x128xf32>
    %15 = arith.truncf %14 : vector<128x128xf32> to vector<128x128xbf16>
    %cst_14 = arith.constant dense<0.000000e+00> : vector<128x128xf32>
    %16 = tpu.matmul %15, %7, %cst_14 {dimension_numbers = #tpu.dot_dimension_numbers<[1], [0], [0], [1], [0, 0, 1, 1], [], []>} : vector<128x128xbf16>, vector<128x128xbf16>, vector<128x128xf32> -> vector<128x128xf32>
    %17 = arith.truncf %16 : vector<128x128xf32> to vector<128x128xbf16>
    %cst_15 = arith.constant dense<0.000000e+00> : vector<128x128xf32>
    %18 = tpu.matmul %0, %17, %cst_15 {dimension_numbers = #tpu.dot_dimension_numbers<[1], [0], [0], [1], [0, 0, 1, 1], [], []>} : vector<128x128xbf16>, vector<128x128xbf16>, vector<128x128xf32> -> vector<128x128xf32>
    %19 = arith.truncf %18 : vector<128x128xf32> to vector<128x128xbf16>
    %cst_16 = arith.constant dense<0.000000e+00> : vector<128x128xf32>
    %20 = tpu.matmul %0, %19, %cst_16 {dimension_numbers = #tpu.dot_dimension_numbers<[1], [0], [0], [1], [0, 0, 1, 1], [], []>} : vector<128x128xbf16>, vector<128x128xbf16>, vector<128x128xf32> -> vector<128x128xf32>
    %21 = vector.broadcast %8 : vector<1x128xf32> to vector<128x128xf32>
    %22 = arith.addf %20, %21 : vector<128x128xf32>
    %c0_17 = arith.constant 0 : index
    %c0_18 = arith.constant 0 : index
    %23 = vector.load %arg7[%c0_17, %c0_18] : memref<128x128xbf16, #tpu.memory_space<vmem>>, vector<128x128xbf16>
    %c0_19 = arith.constant 0 : index
    %c0_20 = arith.constant 0 : index
    %24 = vector.load %arg8[%c0_19, %c0_20] : memref<1x128xf32, #tpu.memory_space<vmem>>, vector<1x128xf32>
    %c0_21 = arith.constant 0 : index
    %c0_22 = arith.constant 0 : index
    %25 = vector.load %arg9[%c0_21, %c0_22] : memref<128x128xbf16, #tpu.memory_space<vmem>>, vector<128x128xbf16>
    %c0_23 = arith.constant 0 : index
    %c0_24 = arith.constant 0 : index
    %26 = vector.load %arg10[%c0_23, %c0_24] : memref<1x128xf32, #tpu.memory_space<vmem>>, vector<1x128xf32>
    %27 = arith.truncf %2 : vector<128x128xf32> to vector<128x128xbf16>
    %cst_25 = arith.constant dense<0.000000e+00> : vector<128x128xf32>
    %28 = tpu.matmul %27, %23, %cst_25 {dimension_numbers = #tpu.dot_dimension_numbers<[1], [0], [0], [1], [0, 0, 1, 1], [], []>} : vector<128x128xbf16>, vector<128x128xbf16>, vector<128x128xf32> -> vector<128x128xf32>
    %29 = vector.broadcast %24 : vector<1x128xf32> to vector<128x128xf32>
    %30 = arith.addf %28, %29 : vector<128x128xf32>
    %cst_26 = arith.constant 0.000000e+00 : f32
    %31 = vector.broadcast %cst_26 : f32 to vector<128x128xf32>
    %32 = arith.maximumf %30, %31 : vector<128x128xf32>
    %33 = arith.truncf %32 : vector<128x128xf32> to vector<128x128xbf16>
    %cst_27 = arith.constant dense<0.000000e+00> : vector<128x128xf32>
    %34 = tpu.matmul %33, %25, %cst_27 {dimension_numbers = #tpu.dot_dimension_numbers<[1], [0], [0], [1], [0, 0, 1, 1], [], []>} : vector<128x128xbf16>, vector<128x128xbf16>, vector<128x128xf32> -> vector<128x128xf32>
    %35 = arith.truncf %34 : vector<128x128xf32> to vector<128x128xbf16>
    %cst_28 = arith.constant dense<0.000000e+00> : vector<128x128xf32>
    %36 = tpu.matmul %0, %35, %cst_28 {dimension_numbers = #tpu.dot_dimension_numbers<[1], [0], [0], [1], [0, 0, 1, 1], [], []>} : vector<128x128xbf16>, vector<128x128xbf16>, vector<128x128xf32> -> vector<128x128xf32>
    %37 = vector.broadcast %26 : vector<1x128xf32> to vector<128x128xf32>
    %38 = arith.addf %36, %37 : vector<128x128xf32>
    %c0_29 = arith.constant 0 : index
    %c0_30 = arith.constant 0 : index
    %39 = vector.load %arg11[%c0_29, %c0_30] : memref<128x128xbf16, #tpu.memory_space<vmem>>, vector<128x128xbf16>
    %40 = arith.truncf %22 : vector<128x128xf32> to vector<128x128xbf16>
    %cst_31 = arith.constant dense<0.000000e+00> : vector<128x128xf32>
    %41 = tpu.matmul %40, %39, %cst_31 {dimension_numbers = #tpu.dot_dimension_numbers<[1], [0], [0], [1], [0, 0, 1, 1], [], []>} : vector<128x128xbf16>, vector<128x128xbf16>, vector<128x128xf32> -> vector<128x128xf32>
    %c0_32 = arith.constant 0 : index
    %c0_33 = arith.constant 0 : index
    %42 = vector.load %arg12[%c0_32, %c0_33] : memref<1x128xf32, #tpu.memory_space<vmem>>, vector<1x128xf32>
    %43 = vector.broadcast %42 : vector<1x128xf32> to vector<128x128xf32>
    %44 = arith.addf %41, %43 : vector<128x128xf32>
    %cst_34 = arith.constant 0.000000e+00 : f32
    %45 = vector.broadcast %cst_34 : f32 to vector<128x128xf32>
    %46 = arith.cmpf ogt, %44, %45 : vector<128x128xf32>
    %cst_35 = arith.constant 0.000000e+00 : f32
    %47 = vector.broadcast %cst_35 : f32 to vector<128x128xf32>
    %48 = arith.minimumf %44, %47 : vector<128x128xf32>
    %49 = math.exp %48 : vector<128x128xf32>
    %cst_36 = arith.constant 1.000000e+00 : f32
    %50 = vector.broadcast %cst_36 : f32 to vector<128x128xf32>
    %51 = arith.subf %49, %50 : vector<128x128xf32>
    %52 = arith.select %46, %44, %51 : vector<128x128xi1>, vector<128x128xf32>
    %c0_37 = arith.constant 0 : index
    %c0_38 = arith.constant 0 : index
    %53 = vector.load %arg13[%c0_37, %c0_38] : memref<128x128xbf16, #tpu.memory_space<vmem>>, vector<128x128xbf16>
    %54 = arith.truncf %52 : vector<128x128xf32> to vector<128x128xbf16>
    %cst_39 = arith.constant dense<0.000000e+00> : vector<128x128xf32>
    %55 = tpu.matmul %54, %53, %cst_39 {dimension_numbers = #tpu.dot_dimension_numbers<[1], [0], [0], [1], [0, 0, 1, 1], [], []>} : vector<128x128xbf16>, vector<128x128xbf16>, vector<128x128xf32> -> vector<128x128xf32>
    %c0_40 = arith.constant 0 : index
    %c0_41 = arith.constant 0 : index
    %56 = vector.load %arg14[%c0_40, %c0_41] : memref<1x128xf32, #tpu.memory_space<vmem>>, vector<1x128xf32>
    %57 = vector.broadcast %56 : vector<1x128xf32> to vector<128x128xf32>
    %58 = arith.addf %55, %57 : vector<128x128xf32>
    %c0_42 = arith.constant 0 : index
    %c0_43 = arith.constant 0 : index
    %59 = vector.load %arg15[%c0_42, %c0_43] : memref<128x128xf32, #tpu.memory_space<vmem>>, vector<128x128xf32>
    tpu.vector_store %arg15[%c0_42, %c0_43], %22 {strides = array<i32>} : memref<128x128xf32, #tpu.memory_space<vmem>>, vector<128x128xf32>,
    %c0_44 = arith.constant 0 : index
    %c0_45 = arith.constant 0 : index
    %60 = vector.load %arg16[%c0_44, %c0_45] : memref<128x128xf32, #tpu.memory_space<vmem>>, vector<128x128xf32>
    tpu.vector_store %arg16[%c0_44, %c0_45], %38 {strides = array<i32>} : memref<128x128xf32, #tpu.memory_space<vmem>>, vector<128x128xf32>,
    %c0_46 = arith.constant 0 : index
    %c0_47 = arith.constant 0 : index
    %61 = vector.load %arg17[%c0_46, %c0_47] : memref<128x128xf32, #tpu.memory_space<vmem>>, vector<128x128xf32>
    tpu.vector_store %arg17[%c0_46, %c0_47], %58 {strides = array<i32>} : memref<128x128xf32, #tpu.memory_space<vmem>>, vector<128x128xf32>,
    return
  }
  func.func @transform_0(%arg0: i32) -> (i32, i32) {
    %c0_i32 = arith.constant 0 : i32
    %c0_i32_0 = arith.constant 0 : i32
    %c0_i32_1 = arith.constant 0 : i32
    return %c0_i32, %c0_i32_0 : i32, i32
  }
  func.func @transform_1(%arg0: i32) -> (i32, i32) {
    %c0_i32 = arith.constant 0 : i32
    %c0_i32_0 = arith.constant 0 : i32
    %c0_i32_1 = arith.constant 0 : i32
    return %c0_i32, %c0_i32_0 : i32, i32
  }
  func.func @transform_2(%arg0: i32) -> (i32, i32) {
    %c0_i32 = arith.constant 0 : i32
    %c0_i32_0 = arith.constant 0 : i32
    %c0_i32_1 = arith.constant 0 : i32
    return %c0_i32, %c0_i32_0 : i32, i32
  }
  func.func @transform_3(%arg0: i32) -> (i32, i32) {
    %c0_i32 = arith.constant 0 : i32
    %c0_i32_0 = arith.constant 0 : i32
    %c0_i32_1 = arith.constant 0 : i32
    return %c0_i32, %c0_i32_0 : i32, i32
  }
  func.func @transform_4(%arg0: i32) -> (i32, i32) {
    %c0_i32 = arith.constant 0 : i32
    %c0_i32_0 = arith.constant 0 : i32
    %c0_i32_1 = arith.constant 0 : i32
    return %c0_i32, %c0_i32_0 : i32, i32
  }
  func.func @transform_5(%arg0: i32) -> (i32, i32) {
    %c0_i32 = arith.constant 0 : i32
    %c0_i32_0 = arith.constant 0 : i32
    %c0_i32_1 = arith.constant 0 : i32
    return %c0_i32, %c0_i32_0 : i32, i32
  }
  func.func @transform_6(%arg0: i32) -> (i32, i32) {
    %c0_i32 = arith.constant 0 : i32
    %c0_i32_0 = arith.constant 0 : i32
    %c0_i32_1 = arith.constant 0 : i32
    return %c0_i32, %c0_i32_0 : i32, i32
  }
  func.func @transform_7(%arg0: i32) -> (i32, i32) {
    %c0_i32 = arith.constant 0 : i32
    %c0_i32_0 = arith.constant 0 : i32
    %c0_i32_1 = arith.constant 0 : i32
    return %c0_i32, %c0_i32_0 : i32, i32
  }
  func.func @transform_8(%arg0: i32) -> (i32, i32) {
    %c0_i32 = arith.constant 0 : i32
    %c0_i32_0 = arith.constant 0 : i32
    %c0_i32_1 = arith.constant 0 : i32
    return %c0_i32, %c0_i32_0 : i32, i32
  }
  func.func @transform_9(%arg0: i32) -> (i32, i32) {
    %c0_i32 = arith.constant 0 : i32
    %c0_i32_0 = arith.constant 0 : i32
    %c0_i32_1 = arith.constant 0 : i32
    return %c0_i32, %c0_i32_0 : i32, i32
  }
  func.func @transform_10(%arg0: i32) -> (i32, i32) {
    %c0_i32 = arith.constant 0 : i32
    %c0_i32_0 = arith.constant 0 : i32
    %c0_i32_1 = arith.constant 0 : i32
    return %c0_i32, %c0_i32_0 : i32, i32
  }
  func.func @transform_11(%arg0: i32) -> (i32, i32) {
    %c0_i32 = arith.constant 0 : i32
    %c0_i32_0 = arith.constant 0 : i32
    %c0_i32_1 = arith.constant 0 : i32
    return %c0_i32, %c0_i32_0 : i32, i32
  }
  func.func @transform_12(%arg0: i32) -> (i32, i32) {
    %c0_i32 = arith.constant 0 : i32
    %c0_i32_0 = arith.constant 0 : i32
    %c0_i32_1 = arith.constant 0 : i32
    return %c0_i32, %c0_i32_0 : i32, i32
  }
  func.func @transform_13(%arg0: i32) -> (i32, i32) {
    %c0_i32 = arith.constant 0 : i32
    %c0_i32_0 = arith.constant 0 : i32
    %c0_i32_1 = arith.constant 0 : i32
    return %c0_i32, %c0_i32_0 : i32, i32
  }
  func.func @transform_14(%arg0: i32) -> (i32, i32) {
    %c0_i32 = arith.constant 0 : i32
    %c0_i32_0 = arith.constant 0 : i32
    %c0_i32_1 = arith.constant 0 : i32
    return %c0_i32, %c0_i32_0 : i32, i32
  }
  func.func @transform_15(%arg0: i32) -> (i32, i32) {
    %c0_i32 = arith.constant 0 : i32
    %c0_i32_0 = arith.constant 0 : i32
    %c0_i32_1 = arith.constant 0 : i32
    return %c0_i32, %c0_i32_0 : i32, i32
  }
  func.func @transform_16(%arg0: i32) -> (i32, i32) {
    %c0_i32 = arith.constant 0 : i32
    %c0_i32_0 = arith.constant 0 : i32
    %c0_i32_1 = arith.constant 0 : i32
    return %c0_i32, %c0_i32_0 : i32, i32
  }
}

</mosaic_0001>

<bundles_post_ra>
// kernel: tpu_custom_call.1
= control target key start
LH: loop header
LB: loop body
LE: loop exit
PB: predicated region body
PF: predicated region fallthrough
CT: control target
= control target key end

     0   :  { %s3608_s0 = inlined_call_operand.hbm [shape: bf16[128,128], index: 0, kind: input, shape index: {}]   ;;  %s3609_s1 = inlined_call_operand.hbm [shape: bf16[128,128], index: 1, kind: input, shape index: {}]   ;;  %s3610_s2 = inlined_call_operand.hbm [shape: bf16[128,128], index: 2, kind: input, shape index: {}]   ;;  %s3611_s3 = inlined_call_operand.vmem [shape: f32[1,128], index: 3, kind: input, shape index: {}]   ;;  %s3612_s4 = inlined_call_operand.hbm [shape: bf16[128,128], index: 4, kind: input, shape index: {}]   ;;  %s3613_s5 = inlined_call_operand.vmem [shape: f32[1,128], index: 5, kind: input, shape index: {}]   ;;  %s3614_s6 = inlined_call_operand.hbm [shape: bf16[128,128], index: 6, kind: input, shape index: {}]   ;;  %s3615_s7 = inlined_call_operand.vmem [shape: f32[1,128], index: 7, kind: input, shape index: {}]   ;;  %s3616_s8 = inlined_call_operand.hbm [shape: bf16[128,128], index: 8, kind: input, shape index: {}]   ;;  %s3617_s9 = inlined_call_operand.vmem [shape: f32[1,128], index: 9, kind: input, shape index: {}]   ;;  %s3618_s10 = inlined_call_operand.hbm [shape: bf16[128,128], index: 10, kind: input, shape index: {}]   ;;  %s3619_s11 = inlined_call_operand.vmem [shape: f32[1,128], index: 11, kind: input, shape index: {}]   ;;  %s3620_s12 = inlined_call_operand.hbm [shape: bf16[128,128], index: 12, kind: input, shape index: {}]   ;;  %s3621_s13 = inlined_call_operand.vmem [shape: f32[1,128], index: 13, kind: input, shape index: {}]   ;;  %s3622_s14 = inlined_call_operand.hbm [shape: f32[128,128], index: 14, kind: output, shape index: {0}]   ;;  %s3623_s15 = inlined_call_operand.hbm [shape: f32[128,128], index: 15, kind: output, shape index: {1}]   ;;  %s3624_s16 = inlined_call_operand.hbm [shape: f32[128,128], index: 16, kind: output, shape index: {2}]  }
   0x1   :  { %3626 = sst [smem:[#allocation27_spill]] %s3608_s0 }
   0x2   :  { %22 = vsyncpa [#allocation3], 0 }
   0x3   :  { %23 = vsyncpa [#allocation6], 0 }
   0x4   :  { %24 = vsyncpa [#allocation9], 0 }
   0x5   :  { %25 = vsyncpa [#allocation12], 0 }
   0x6   :  { %26 = vsyncpa [#allocation15], 0 }
   0x7   :  { %27 = vsyncpa [#allocation4], 0 }
   0x8   :  { %28 = vsyncpa [#allocation18], 0  ;;  %s3087_s21 = smov [#allocation5]   ;;  %s3088_s23 = smov [#allocation8]  }
   0x9   :  { %s46_s22 = sshll.u32 %s3087_s21, 4  ;;  %s72_s24 = sshll.u32 %s3088_s23, 4  ;;  %s47_s22 = int_to_ptr.vmem [resolvable:$true] %s46_s22  ;;  %s3187_s24 = int_to_ptr.vmem [resolvable:$true] %s72_s24 }
   0xa   :  { %s2831_s27 = scalar_lea.hbm %s3609_s1, 1024 }
   0xb   :  { %p2832_p0 = scmp.ne.s32.totalorder %s3609_s1, %s2831_s27  ;;  %p2835_p1 = scmp.lt.u32.totalorder %s2831_s27, %s3609_s1 }
   0xd   :  { %p2837_p2 = pnand %p2835_p1, %p2832_p0 }
   0xf   :  { %2840 = shalt.err (!%p2837_p2)
}
  0x10   :  { %s2841_s17 = scalar_lea.vmem %s47_s22, 1024  ;;  %p2846_p4 = scmp.lt.s32.totalorder %s47_s22, %s47_s22 }
  0x11   :  { %p2842_p3 = scmp.ne.s32.totalorder %s47_s22, %s2841_s17  ;;  %p2847_p5 = scmp.lt.s32.totalorder %s2841_s17, %s2841_s17 }
  0x13   :  { %p2848_p6 = por %p2847_p5, %p2846_p4 }
  0x15   :  { %p2849_p7 = pnand %p2848_p6, %p2842_p3 }
  0x17   :  { %2852 = shalt.err (!%p2849_p7)
}
  0x18   :  { %s3089_s18 = smov 64   ;;  %s3090_s19 = smov 4  }
  0x19   :  { %52 = dma.hbm_to_vmem [thread:$0]  %s3609_s1, 1024, %s47_s22, [#allocation6], %s3089_s18, %s3089_s18, %s3090_s19  }
  0x1a   :  { %s2853_s26 = scalar_lea.hbm %s3612_s4, 1024 }
  0x1b   :  { %p2854_p8 = scmp.ne.s32.totalorder %s3612_s4, %s2853_s26  ;;  %p2857_p9 = scmp.lt.u32.totalorder %s2853_s26, %s3612_s4 }
  0x1d   :  { %p2859_p10 = pnand %p2857_p9, %p2854_p8 }
  0x1f   :  { %2862 = shalt.err (!%p2859_p10)
}
  0x20   :  { %s2863_s0 = scalar_lea.vmem %s3187_s24, 1024  ;;  %p2868_p12 = scmp.lt.s32.totalorder %s3187_s24, %s3187_s24 }
  0x21   :  { %p2864_p11 = scmp.ne.s32.totalorder %s3187_s24, %s2863_s0  ;;  %p2869_p13 = scmp.lt.s32.totalorder %s2863_s0, %s2863_s0 }
  0x23   :  { %p2870_p0 = por %p2869_p13, %p2868_p12 }
  0x25   :  { %p2871_p1 = pnand %p2870_p0, %p2864_p11 }
  0x27   :  { %2874 = shalt.err (!%p2871_p1)
}
  0x28   :  { %78 = dma.hbm_to_vmem [thread:$0]  %s3612_s4, 1024, %s3187_s24, [#allocation9], %s3089_s18, %s3089_s18, %s3090_s19  }
  0x29   :  { %s3091_s17 = smov [#allocation11]   ;;  %s3092_s21 = smov [#allocation2]  }
  0x2a   :  { %s100_s20 = sshll.u32 %s3091_s17, 4  ;;  %s34_s23 = sshll.u32 %s3092_s21, 4  ;;  %s101_s20 = int_to_ptr.vmem [resolvable:$true] %s100_s20  ;;  %s3224_s23 = int_to_ptr.vmem [resolvable:$true] %s34_s23 }
  0x2b   :  { %s2875_s27 = scalar_lea.hbm %s3616_s8, 1024 }
  0x2c   :  { %p2876_p2 = scmp.ne.s32.totalorder %s3616_s8, %s2875_s27  ;;  %p2879_p3 = scmp.lt.u32.totalorder %s2875_s27, %s3616_s8 }
  0x2e   :  { %p2881_p4 = pnand %p2879_p3, %p2876_p2 }
  0x30   :  { %2884 = shalt.err (!%p2881_p4)
}
  0x31   :  { %s2885_s4 = scalar_lea.vmem %s101_s20, 1024  ;;  %p2890_p6 = scmp.lt.s32.totalorder %s101_s20, %s101_s20 }
  0x32   :  { %p2886_p5 = scmp.ne.s32.totalorder %s101_s20, %s2885_s4  ;;  %p2891_p7 = scmp.lt.s32.totalorder %s2885_s4, %s2885_s4 }
  0x34   :  { %p2892_p8 = por %p2891_p7, %p2890_p6 }
  0x36   :  { %p2893_p9 = pnand %p2892_p8, %p2886_p5 }
  0x38   :  { %2896 = shalt.err (!%p2893_p9)
}
  0x39   :  { %106 = dma.hbm_to_vmem [thread:$0]  %s3616_s8, 1024, %s101_s20, [#allocation12], %s3089_s18, %s3089_s18, %s3090_s19  }
  0x3a   :  { %s3627_s21 = sld [smem:[#allocation27_spill]] }
  0x40   :  { %s2897_s25 = scalar_lea.hbm %s3627_s21, 1024 }
  0x41   :  { %p2898_p10 = scmp.ne.s32.totalorder %s3627_s21, %s2897_s25  ;;  %p2901_p11 = scmp.lt.u32.totalorder %s2897_s25, %s3627_s21 }
  0x43   :  { %p2903_p12 = pnand %p2901_p11, %p2898_p10 }
  0x45   :  { %2906 = shalt.err (!%p2903_p12)
}
  0x46   :  { %s2907_s30 = scalar_lea.vmem %s3224_s23, 1024  ;;  %p2912_p0 = scmp.lt.s32.totalorder %s3224_s23, %s3224_s23 }
  0x47   :  { %p2908_p13 = scmp.ne.s32.totalorder %s3224_s23, %s2907_s30  ;;  %p2913_p1 = scmp.lt.s32.totalorder %s2907_s30, %s2907_s30 }
  0x49   :  { %p2914_p2 = por %p2913_p1, %p2912_p0 }
  0x4b   :  { %p2915_p3 = pnand %p2914_p2, %p2908_p13 }
  0x4d   :  { %2918 = shalt.err (!%p2915_p3)
}
  0x4e   :  { %40 = dma.hbm_to_vmem [thread:$0]  %s3627_s21, 1024, %s3224_s23, [#allocation3], %s3089_s18, %s3089_s18, %s3090_s19  }
  0x4f   :  { %s3093_s0 = smov [#allocation7]   ;;  %s3094_s24 = smov [#allocation10]  }
  0x50   :  { %s58_s4 = sshll.u32 %s3093_s0, 4  ;;  %s86_s1 = sshll.u32 %s3094_s24, 4  ;;  %s59_s4 = int_to_ptr.vmem [resolvable:$true] %s58_s4  ;;  %s3261_s1 = int_to_ptr.vmem [resolvable:$true] %s86_s1 }
  0x51   :  { %s2919_s25 = scalar_lea.hbm %s3610_s2, 1024 }
  0x52   :  { %p2920_p4 = scmp.ne.s32.totalorder %s3610_s2, %s2919_s25  ;;  %p2923_p5 = scmp.lt.u32.totalorder %s2919_s25, %s3610_s2 }
  0x54   :  { %p2925_p6 = pnand %p2923_p5, %p2920_p4 }
  0x56   :  { %2928 = shalt.err (!%p2925_p6)
}
  0x57   :  { %s2929_s23 = scalar_lea.vmem %s59_s4, 1024  ;;  %p2934_p8 = scmp.lt.s32.totalorder %s59_s4, %s59_s4 }
  0x58   :  { %p2930_p7 = scmp.ne.s32.totalorder %s59_s4, %s2929_s23  ;;  %p2935_p9 = scmp.lt.s32.totalorder %s2929_s23, %s2929_s23 }
  0x5a   :  { %p2936_p10 = por %p2935_p9, %p2934_p8 }
  0x5c   :  { %p2937_p11 = pnand %p2936_p10, %p2930_p7 }
  0x5e   :  { %2940 = shalt.err (!%p2937_p11)
}
  0x5f   :  { %64 = dma.hbm_to_vmem [thread:$0]  %s3610_s2, 1024, %s59_s4, [#allocation6], %s3089_s18, %s3089_s18, %s3090_s19  }
  0x60   :  { %s2941_s0 = scalar_lea.hbm %s3614_s6, 1024 }
  0x61   :  { %p2942_p12 = scmp.ne.s32.totalorder %s3614_s6, %s2941_s0  ;;  %p2945_p13 = scmp.lt.u32.totalorder %s2941_s0, %s3614_s6 }
  0x63   :  { %p2947_p0 = pnand %p2945_p13, %p2942_p12 }
  0x65   :  { %2950 = shalt.err (!%p2947_p0)
}
  0x66   :  { %s2951_s26 = scalar_lea.vmem %s3261_s1, 1024  ;;  %p2956_p2 = scmp.lt.s32.totalorder %s3261_s1, %s3261_s1 }
  0x67   :  { %p2952_p1 = scmp.ne.s32.totalorder %s3261_s1, %s2951_s26  ;;  %p2957_p3 = scmp.lt.s32.totalorder %s2951_s26, %s2951_s26 }
  0x69   :  { %p2958_p4 = por %p2957_p3, %p2956_p2 }
  0x6b   :  { %p2959_p5 = pnand %p2958_p4, %p2952_p1 }
  0x6d   :  { %2962 = shalt.err (!%p2959_p5)
}
  0x6e   :  { %92 = dma.hbm_to_vmem [thread:$0]  %s3614_s6, 1024, %s3261_s1, [#allocation9], %s3089_s18, %s3089_s18, %s3090_s19  }
  0x6f   :  { %s3095_s27 = smov [#allocation13]   ;;  %s3096_s29 = smov [#allocation14]  }
  0x70   :  { %s114_s28 = sshll.u32 %s3095_s27, 4  ;;  %s128_s23 = sshll.u32 %s3096_s29, 4  ;;  %s115_s28 = int_to_ptr.vmem [resolvable:$true] %s114_s28  ;;  %s3298_s23 = int_to_ptr.vmem [resolvable:$true] %s128_s23 }
  0x71   :  { %s2963_s8 = scalar_lea.hbm %s3618_s10, 1024 }
  0x72   :  { %p2964_p6 = scmp.ne.s32.totalorder %s3618_s10, %s2963_s8  ;;  %p2967_p7 = scmp.lt.u32.totalorder %s2963_s8, %s3618_s10 }
  0x74   :  { %p2969_p8 = pnand %p2967_p7, %p2964_p6 }
  0x76   :  { %2972 = shalt.err (!%p2969_p8)
}
  0x77   :  { %s2973_s6 = scalar_lea.vmem %s115_s28, 1024  ;;  %p2978_p10 = scmp.lt.s32.totalorder %s115_s28, %s115_s28 }
  0x78   :  { %p2974_p9 = scmp.ne.s32.totalorder %s115_s28, %s2973_s6  ;;  %p2979_p11 = scmp.lt.s32.totalorder %s2973_s6, %s2973_s6 }
  0x7a   :  { %p2980_p12 = por %p2979_p11, %p2978_p10 }
  0x7c   :  { %p2981_p13 = pnand %p2980_p12, %p2974_p9 }
  0x7e   :  { %2984 = shalt.err (!%p2981_p13)
}
  0x7f   :  { %120 = dma.hbm_to_vmem [thread:$0]  %s3618_s10, 1024, %s115_s28, [#allocation12], %s3089_s18, %s3089_s18, %s3090_s19  }
  0x80   :  { %s2985_s2 = scalar_lea.hbm %s3620_s12, 1024 }
  0x81   :  { %p2986_p0 = scmp.ne.s32.totalorder %s3620_s12, %s2985_s2  ;;  %p2989_p1 = scmp.lt.u32.totalorder %s2985_s2, %s3620_s12 }
  0x83   :  { %p2991_p2 = pnand %p2989_p1, %p2986_p0 }
  0x85   :  { %2994 = shalt.err (!%p2991_p2)
}
  0x86   :  { %s2995_s30 = scalar_lea.vmem %s3298_s23, 1024  ;;  %p3000_p4 = scmp.lt.s32.totalorder %s3298_s23, %s3298_s23 }
  0x87   :  { %p2996_p3 = scmp.ne.s32.totalorder %s3298_s23, %s2995_s30  ;;  %p3001_p5 = scmp.lt.s32.totalorder %s2995_s30, %s2995_s30 }
  0x89   :  { %p3002_p6 = por %p3001_p5, %p3000_p4 }
  0x8b   :  { %p3003_p7 = pnand %p3002_p6, %p2996_p3 }
  0x8d   :  { %3006 = shalt.err (!%p3003_p7)
}
  0x8e   :  { %134 = dma.hbm_to_vmem [thread:$0]  %s3620_s12, 1024, %s3298_s23, [#allocation15], %s3089_s18, %s3089_s18, %s3090_s19  }
  0x8f   :  { %3073 = dma.done.wait [#allocation3], 1024  }
  0x90   :  { %3074 = vsyncadd [#allocation3], 4294966272 }
  0x91   :  { %3075 = dma.done.wait [#allocation6], 2048  }
  0x92   :  { %3076 = vsyncadd [#allocation6], 4294965248 }
  0x93   :  { %3077 = dma.done.wait [#allocation9], 2048  }
  0x94   :  { %3078 = vsyncadd [#allocation9], 4294965248 }
  0x95   :  { %3079 = dma.done.wait [#allocation12], 2048  }
  0x96   :  { %3080 = vsyncadd [#allocation12], 4294965248 }
  0x97   :  { %3081 = dma.done.wait [#allocation15], 1024  }
  0x98   :  { %3082 = vsyncadd [#allocation15], 4294966272  ;;  %v2728_v0 = vld [vmem:[#allocation5] sm:$0xff]   ;;  %v2729_v1 = vld [vmem:[#allocation5 + $0x8] sm:$0xff]   ;;  %s3098_s24 = smov [#allocation16]  }
  0x99   :  { %2345 = vmatprep.subr.bf16.mxu0 %v2728_v0  ;;  %v2730_v2 = vld [vmem:[#allocation5 + $0x10] sm:$0xff]   ;;  %v2731_v3 = vld [vmem:[#allocation5 + $0x18] sm:$0xff]   ;;  %v3335_v4 = vld [vmem:[#allocation2] sm:$0xff]   ;;  %s2036_s22 = sshll.u32 %s3098_s24, 4  ;;  %s2037_s22 = int_to_ptr.vmem [resolvable:$true] %s2036_s22 }
  0x9a   :  { %2346 = vmatpush3.bf16.msra.mxu0 %v2728_v0  ;;  %2361 = vmatprep.mubr.bf16.mxu0 %v3335_v4  ;;  %v2732_v5 = vld [vmem:[#allocation5 + $0x20] sm:$0xff]   ;;  %v2733_v6 = vld [vmem:[#allocation5 + $0x28] sm:$0xff]   ;;  %v2734_v7 = vld [vmem:[#allocation5 + $0x30] sm:$0xff]  }
  0x9b   :  { %2347 = vmatprep.subr.bf16.mxu0 %v2729_v1  ;;  %2393 = vmatprep.mubr.bf16.mxu1 %v3335_v4  ;;  %v2735_v8 = vld [vmem:[#allocation5 + $0x38] sm:$0xff]   ;;  %v3339_v9 = vld [vmem:[#allocation2 + $0x8] sm:$0xff]   ;;  %v3341_v10 = vld [vmem:[#allocation2 + $0x10] sm:$0xff]  }
  0x9c   :  { %v3345_v11 = vld [vmem:[#allocation2 + $0x18] sm:$0xff]   ;;  %v3347_v12 = vld [vmem:[#allocation2 + $0x20] sm:$0xff]   ;;  %v3351_v13 = vld [vmem:[#allocation2 + $0x28] sm:$0xff]  }
  0x9d   :  { %v3353_v14 = vld [vmem:[#allocation2 + $0x30] sm:$0xff]   ;;  %v3357_v15 = vld [vmem:[#allocation2 + $0x38] sm:$0xff]   ;;  %v2744_v16 = vld [vmem:[#allocation7] sm:$0xff]  }
  0x9e   :  { %2348 = vmatpush3.bf16.msra.mxu0 %v2729_v1  ;;  %v2745_v17 = vld [vmem:[#allocation7 + $0x8] sm:$0xff]   ;;  %v2746_v18 = vld [vmem:[#allocation7 + $0x10] sm:$0xff]   ;;  %v2747_v19 = vld [vmem:[#allocation7 + $0x18] sm:$0xff]  }
  0x9f   :  { %2349 = vmatprep.subr.bf16.mxu0 %v2730_v2  ;;  %v2748_v20 = vld [vmem:[#allocation7 + $0x20] sm:$0xff]   ;;  %v2749_v21 = vld [vmem:[#allocation7 + $0x28] sm:$0xff]   ;;  %v2750_v22 = vld [vmem:[#allocation7 + $0x30] sm:$0xff]  }
  0xa0   :  { %v2751_v47 = vld [vmem:[#allocation7 + $0x38] sm:$0xff]   ;;  %v2752_v48 = vld [vmem:[#allocation8] sm:$0xff]   ;;  %v2753_v49 = vld [vmem:[#allocation8 + $0x8] sm:$0xff]  }
  0xa1   :  { %v2754_v50 = vld [vmem:[#allocation8 + $0x10] sm:$0xff]   ;;  %v2755_v51 = vld [vmem:[#allocation8 + $0x18] sm:$0xff]   ;;  %v2756_v52 = vld [vmem:[#allocation8 + $0x20] sm:$0xff]  }
  0xa2   :  { %2350 = vmatpush3.bf16.msra.mxu0 %v2730_v2  ;;  %v2757_v53 = vld [vmem:[#allocation8 + $0x28] sm:$0xff]  }
  0xa3   :  { %2351 = vmatprep.subr.bf16.mxu0 %v2731_v3 }
  0xa6   :  { %2352 = vmatpush3.bf16.msra.mxu0 %v2731_v3 }
  0xa7   :  { %2353 = vmatprep.subr.bf16.mxu0 %v2732_v5 }
  0xaa   :  { %2354 = vmatpush3.bf16.msra.mxu0 %v2732_v5 }
  0xab   :  { %2355 = vmatprep.subr.bf16.mxu0 %v2733_v6 }
  0xae   :  { %2356 = vmatpush3.bf16.msra.mxu0 %v2733_v6 }
  0xaf   :  { %2357 = vmatprep.subr.bf16.mxu0 %v2734_v7 }
  0xb2   :  { %2358 = vmatpush3.bf16.msra.mxu0 %v2734_v7 }
  0xb3   :  { %2359 = vmatprep.subr.bf16.mxu0 %v2735_v8 }
  0xb6   :  { %2360 = vmatpush3.bf16.msra.mxu0 %v2735_v8 }
  0xb7   :  { %2409 = vmatprep.subr.bf16.mxu0 %v2744_v16 }
  0xb9   :  { %2362 = vmatmul.mubr.bf16.vlgmr.msra.gmra.mrb[0].mxu0 %v3339_v9 }
  0xba   :  { %2365 = vmatprep.mubr.bf16.mxu0 %v3341_v10  ;;  %2410 = vmatpush3.bf16.msra.mxu0 %v2744_v16 }
  0xbb   :  { %2411 = vmatprep.subr.bf16.mxu0 %v2745_v17 }
  0xbe   :  { %2412 = vmatpush3.bf16.msra.mxu0 %v2745_v17 }
  0xbf   :  { %2413 = vmatprep.subr.bf16.mxu0 %v2746_v18 }
  0xc1   :  { %2366 = vmatmul.mubr.bf16.gmra.mrb[4].mxu0 %v3345_v11 }
  0xc2   :  { %2369 = vmatprep.mubr.bf16.mxu0 %v3347_v12  ;;  %2414 = vmatpush3.bf16.msra.mxu0 %v2746_v18 }
  0xc3   :  { %2415 = vmatprep.subr.bf16.mxu0 %v2747_v19 }
  0xc6   :  { %2416 = vmatpush3.bf16.msra.mxu0 %v2747_v19 }
  0xc7   :  { %2417 = vmatprep.subr.bf16.mxu0 %v2748_v20 }
  0xc9   :  { %2370 = vmatmul.mubr.bf16.gmra.mrb[8].mxu0 %v3351_v13 }
  0xca   :  { %2373 = vmatprep.mubr.bf16.mxu0 %v3353_v14  ;;  %2418 = vmatpush3.bf16.msra.mxu0 %v2748_v20 }
  0xcb   :  { %2419 = vmatprep.subr.bf16.mxu0 %v2749_v21 }
  0xce   :  { %2420 = vmatpush3.bf16.msra.mxu0 %v2749_v21 }
  0xcf   :  { %2421 = vmatprep.subr.bf16.mxu0 %v2750_v22 }
  0xd1   :  { %2374 = vmatmul.mubr.bf16.gmra.mrb[12].mxu0 %v3357_v15 }
  0xd2   :  { %2422 = vmatpush3.bf16.msra.mxu0 %v2750_v22  ;;  %v2758_v22 = vld [vmem:[#allocation8 + $0x30] sm:$0xff]  }
  0xd3   :  { %2423 = vmatprep.subr.bf16.mxu0 %v2751_v47 }
  0xd6   :  { %2424 = vmatpush3.bf16.msra.mxu0 %v2751_v47 }
 0x18c   :  { %v2363_v23 = vpop.f32.mrb[0].mxu0 }
 0x18d   :  { %v324_v24 = vpop.f32.mrb[1].mxu0 }
 0x18e   :  { %v2364_v25 = vpop.f32.mrb[2].mxu0 }
 0x18f   :  { %v3360_v26 = vpack.c.bf16 %v2364_v25, %v2363_v23  ;;  %v327_v27 = vpop.f32.mrb[3].mxu0  ;;  %v2759_v23 = vld [vmem:[#allocation8 + $0x38] sm:$0xff]  }
 0x190   :  { %v3362_v28 = vpack.c.bf16 %v327_v27, %v324_v24  ;;  %v2099_v24 = vld [vmem:[%s3611_s3] ss:$0 sm:$0xff] }
 0x192   :  { %2377 = vmatprep.subr.bf16.mxu1 %v3362_v28 }
 0x193   :  { %2378 = vmatpush3.bf16.msra.mxu1 %v3362_v28 }
 0x194   :  { %v2367_v29 = vpop.f32.mrb[4].mxu0  ;;  %2379 = vmatprep.subr.bf16.mxu1 %v3360_v26 }
 0x195   :  { %v340_v30 = vpop.f32.mrb[5].mxu0 }
 0x196   :  { %v2368_v31 = vpop.f32.mrb[6].mxu0 }
 0x197   :  { %v3367_v32 = vpack.c.bf16 %v2368_v31, %v2367_v29  ;;  %v343_v33 = vpop.f32.mrb[7].mxu0  ;;  %2380 = vmatpush3.bf16.msra.mxu1 %v3360_v26 }
 0x198   :  { %v3370_v34 = vpack.c.bf16 %v343_v33, %v340_v30 }
 0x19a   :  { %2381 = vmatprep.subr.bf16.mxu1 %v3370_v34 }
 0x19b   :  { %2382 = vmatpush3.bf16.msra.mxu1 %v3370_v34 }
 0x19c   :  { %v2371_v35 = vpop.f32.mrb[8].mxu0  ;;  %2383 = vmatprep.subr.bf16.mxu1 %v3367_v32 }
 0x19d   :  { %v356_v36 = vpop.f32.mrb[9].mxu0 }
 0x19e   :  { %v2372_v37 = vpop.f32.mrb[10].mxu0 }
 0x19f   :  { %v3375_v38 = vpack.c.bf16 %v2372_v37, %v2371_v35  ;;  %v359_v39 = vpop.f32.mrb[11].mxu0  ;;  %2384 = vmatpush3.bf16.msra.mxu1 %v3367_v32 }
 0x1a0   :  { %v3378_v40 = vpack.c.bf16 %v359_v39, %v356_v36 }
 0x1a2   :  { %2385 = vmatprep.subr.bf16.mxu1 %v3378_v40 }
 0x1a3   :  { %2386 = vmatpush3.bf16.msra.mxu1 %v3378_v40 }
 0x1a4   :  { %v2375_v41 = vpop.f32.mrb[12].mxu0  ;;  %2387 = vmatprep.subr.bf16.mxu1 %v3375_v38 }
 0x1a5   :  { %v372_v42 = vpop.f32.mrb[13].mxu0 }
 0x1a6   :  { %v2376_v43 = vpop.f32.mrb[14].mxu0 }
 0x1a7   :  { %v3383_v44 = vpack.c.bf16 %v2376_v43, %v2375_v41  ;;  %v375_v45 = vpop.f32.mrb[15].mxu0  ;;  %2388 = vmatpush3.bf16.msra.mxu1 %v3375_v38 }
 0x1a8   :  { %v3386_v46 = vpack.c.bf16 %v375_v45, %v372_v42 }
 0x1aa   :  { %2389 = vmatprep.subr.bf16.mxu1 %v3386_v46 }
 0x1ab   :  { %2390 = vmatpush3.bf16.msra.mxu1 %v3386_v46 }
 0x1ac   :  { %2391 = vmatprep.subr.bf16.mxu1 %v3383_v44 }
 0x1af   :  { %2392 = vmatpush3.bf16.msra.mxu1 %v3383_v44 }
 0x1b0   :  { %2441 = vmatprep.subr.bf16.mxu1 %v2752_v48 }
 0x1b2   :  { %2394 = vmatmul.mubr.bf16.vlgmr.msra.gmra.mrb[0].mxu1 %v3339_v9 }
 0x1b3   :  { %2397 = vmatprep.mubr.bf16.mxu1 %v3341_v10  ;;  %2442 = vmatpush3.bf16.msra.mxu1 %v2752_v48 }
 0x1b4   :  { %2443 = vmatprep.subr.bf16.mxu1 %v2753_v49 }
 0x1b7   :  { %2444 = vmatpush3.bf16.msra.mxu1 %v2753_v49 }
 0x1b8   :  { %2445 = vmatprep.subr.bf16.mxu1 %v2754_v50 }
 0x1ba   :  { %2398 = vmatmul.mubr.bf16.gmra.mrb[4].mxu1 %v3345_v11 }
 0x1bb   :  { %2401 = vmatprep.mubr.bf16.mxu1 %v3347_v12  ;;  %2446 = vmatpush3.bf16.msra.mxu1 %v2754_v50 }
 0x1bc   :  { %2447 = vmatprep.subr.bf16.mxu1 %v2755_v51 }
 0x1bf   :  { %2448 = vmatpush3.bf16.msra.mxu1 %v2755_v51 }
 0x1c0   :  { %2449 = vmatprep.subr.bf16.mxu1 %v2756_v52 }
 0x1c2   :  { %2402 = vmatmul.mubr.bf16.gmra.mrb[8].mxu1 %v3351_v13 }
 0x1c3   :  { %2405 = vmatprep.mubr.bf16.mxu1 %v3353_v14  ;;  %2450 = vmatpush3.bf16.msra.mxu1 %v2756_v52 }
 0x1c4   :  { %2451 = vmatprep.subr.bf16.mxu1 %v2757_v53 }
 0x1c7   :  { %2452 = vmatpush3.bf16.msra.mxu1 %v2757_v53 }
 0x1c8   :  { %2453 = vmatprep.subr.bf16.mxu1 %v2758_v22 }
 0x1ca   :  { %2406 = vmatmul.mubr.bf16.gmra.mrb[12].mxu1 %v3357_v15 }
 0x1cb   :  { %2454 = vmatpush3.bf16.msra.mxu1 %v2758_v22 }
 0x1cc   :  { %2455 = vmatprep.subr.bf16.mxu1 %v2759_v23 }
 0x1cf   :  { %2456 = vmatpush3.bf16.msra.mxu1 %v2759_v23 }
 0x285   :  { %v2395_v54 = vpop.f32.mrb[0].mxu1 }
 0x286   :  { %v429_v55 = vpop.f32.mrb[1].mxu1 }
 0x287   :  { %v2396_v56 = vpop.f32.mrb[2].mxu1 }
 0x288   :  { %v527_v57 = vpack.c.bf16 %v2396_v56, %v2395_v54  ;;  %v432_v58 = vpop.f32.mrb[3].mxu1 }
 0x289   :  { %v526_v59 = vpack.c.bf16 %v432_v58, %v429_v55 }
 0x28b   :  { %2425 = vmatprep.mubr.bf16.mxu0 %v526_v59 }
 0x28c   :  { %2426 = vmatmul.mubr.bf16.vlgmr.msra.gmra.mrb[16].mxu0 %v527_v57 }
 0x28d   :  { %v2399_v60 = vpop.f32.mrb[4].mxu1 }
 0x28e   :  { %v445_v61 = vpop.f32.mrb[5].mxu1 }
 0x28f   :  { %v2400_v62 = vpop.f32.mrb[6].mxu1 }
 0x290   :  { %v529_v63 = vpack.c.bf16 %v2400_v62, %v2399_v60  ;;  %v448_v0 = vpop.f32.mrb[7].mxu1 }
 0x291   :  { %v528_v1 = vpack.c.bf16 %v448_v0, %v445_v61 }
 0x293   :  { %2429 = vmatprep.mubr.bf16.mxu0 %v528_v1 }
 0x294   :  { %2430 = vmatmul.mubr.bf16.gmra.mrb[20].mxu0 %v529_v63 }
 0x295   :  { %v2403_v2 = vpop.f32.mrb[8].mxu1 }
 0x296   :  { %v461_v3 = vpop.f32.mrb[9].mxu1 }
 0x297   :  { %v2404_v5 = vpop.f32.mrb[10].mxu1 }
 0x298   :  { %v531_v6 = vpack.c.bf16 %v2404_v5, %v2403_v2  ;;  %v464_v7 = vpop.f32.mrb[11].mxu1 }
 0x299   :  { %v530_v8 = vpack.c.bf16 %v464_v7, %v461_v3 }
 0x29b   :  { %2433 = vmatprep.mubr.bf16.mxu0 %v530_v8 }
 0x29c   :  { %2434 = vmatmul.mubr.bf16.gmra.mrb[24].mxu0 %v531_v6 }
 0x29d   :  { %v2407_v16 = vpop.f32.mrb[12].mxu1 }
 0x29e   :  { %v477_v17 = vpop.f32.mrb[13].mxu1 }
 0x29f   :  { %v2408_v18 = vpop.f32.mrb[14].mxu1 }
 0x2a0   :  { %v533_v19 = vpack.c.bf16 %v2408_v18, %v2407_v16  ;;  %v480_v20 = vpop.f32.mrb[15].mxu1 }
 0x2a1   :  { %v532_v21 = vpack.c.bf16 %v480_v20, %v477_v17 }
 0x2a3   :  { %2437 = vmatprep.mubr.bf16.mxu0 %v532_v21 }
 0x2a4   :  { %2438 = vmatmul.mubr.bf16.gmra.mrb[28].mxu0 %v533_v19 }
 0x2a5   :  { %2489 = vmatprep.mubr.bf16.mxu0 %v3335_v4 }
 0x35f   :  { %v2427_v25 = vpop.f32.mrb[16].mxu0 }
 0x360   :  { %v631_v27 = vadd.f32 %v2427_v25, %v2099_v24  ;;  %v622_v29 = vpop.f32.mrb[17].mxu0 }
 0x361   :  { %v623_v30 = vadd.f32 %v2099_v24, %v622_v29  ;;  %v2428_v31 = vpop.f32.mrb[18].mxu0 }
 0x362   :  { %v634_v33 = vadd.f32 %v2428_v31, %v2099_v24  ;;  %v625_v35 = vpop.f32.mrb[19].mxu0  ;;  %v687_v37 = vmax.f32 %v631_v27, 0.0 }
 0x363   :  { %v626_v36 = vadd.f32 %v2099_v24, %v625_v35  ;;  %v685_v41 = vmax.f32 %v623_v30, 0.0 }
 0x364   :  { %v688_v39 = vmax.f32 %v634_v33, 0.0 }
 0x365   :  { %v686_v42 = vmax.f32 %v626_v36, 0.0 }
 0x366   :  { %v702_v43 = vpack.c.bf16 %v688_v39, %v687_v37 }
 0x367   :  { %v701_v45 = vpack.c.bf16 %v686_v42, %v685_v41  ;;  %v2431_v47 = vpop.f32.mrb[20].mxu0 }
 0x368   :  { %v647_v48 = vadd.f32 %v2431_v47, %v2099_v24  ;;  %v638_v49 = vpop.f32.mrb[21].mxu0 }
 0x369   :  { %v639_v50 = vadd.f32 %v2099_v24, %v638_v49  ;;  %v2432_v51 = vpop.f32.mrb[22].mxu0  ;;  %2457 = vmatprep.mubr.bf16.mxu1 %v701_v45 }
 0x36a   :  { %v650_v52 = vadd.f32 %v2432_v51, %v2099_v24  ;;  %v641_v53 = vpop.f32.mrb[23].mxu0  ;;  %2458 = vmatmul.mubr.bf16.vlgmr.msra.gmra.mrb[16].mxu1 %v702_v43  ;;  %v691_v55 = vmax.f32 %v647_v48, 0.0 }
 0x36b   :  { %v642_v54 = vadd.f32 %v2099_v24, %v641_v53  ;;  %v689_v57 = vmax.f32 %v639_v50, 0.0 }
 0x36c   :  { %v692_v56 = vmax.f32 %v650_v52, 0.0 }
 0x36d   :  { %v690_v58 = vmax.f32 %v642_v54, 0.0 }
 0x36e   :  { %v704_v59 = vpack.c.bf16 %v692_v56, %v691_v55 }
 0x36f   :  { %v703_v60 = vpack.c.bf16 %v690_v58, %v689_v57  ;;  %v2435_v61 = vpop.f32.mrb[24].mxu0 }
 0x370   :  { %v663_v62 = vadd.f32 %v2435_v61, %v2099_v24  ;;  %v654_v63 = vpop.f32.mrb[25].mxu0 }
 0x371   :  { %v655_v0 = vadd.f32 %v2099_v24, %v654_v63  ;;  %v2436_v1 = vpop.f32.mrb[26].mxu0  ;;  %2461 = vmatprep.mubr.bf16.mxu1 %v703_v60 }
 0x372   :  { %v666_v2 = vadd.f32 %v2436_v1, %v2099_v24  ;;  %v657_v3 = vpop.f32.mrb[27].mxu0  ;;  %2462 = vmatmul.mubr.bf16.gmra.mrb[20].mxu1 %v704_v59  ;;  %v695_v6 = vmax.f32 %v663_v62, 0.0  ;;  %v2760_v1 = vld [vmem:[#allocation10] sm:$0xff]  }
 0x373   :  { %v658_v5 = vadd.f32 %v2099_v24, %v657_v3  ;;  %v693_v8 = vmax.f32 %v655_v0, 0.0  ;;  %v2762_v3 = vld [vmem:[#allocation10 + $0x10] sm:$0xff]  }
 0x374   :  { %v696_v7 = vmax.f32 %v666_v2, 0.0  ;;  %v2761_v2 = vld [vmem:[#allocation10 + $0x8] sm:$0xff]  }
 0x375   :  { %v694_v16 = vmax.f32 %v658_v5, 0.0  ;;  %v2763_v5 = vld [vmem:[#allocation10 + $0x18] sm:$0xff]  }
 0x376   :  { %v706_v17 = vpack.c.bf16 %v696_v7, %v695_v6  ;;  %v2764_v6 = vld [vmem:[#allocation10 + $0x20] sm:$0xff]   ;;  %v2765_v7 = vld [vmem:[#allocation10 + $0x28] sm:$0xff]  }
 0x377   :  { %v705_v18 = vpack.c.bf16 %v694_v16, %v693_v8  ;;  %v2439_v19 = vpop.f32.mrb[28].mxu0  ;;  %v2766_v8 = vld [vmem:[#allocation10 + $0x30] sm:$0xff]   ;;  %v2767_v16 = vld [vmem:[#allocation10 + $0x38] sm:$0xff]  }
 0x378   :  { %v679_v20 = vadd.f32 %v2439_v19, %v2099_v24  ;;  %v670_v21 = vpop.f32.mrb[29].mxu0 }
 0x379   :  { %v671_v22 = vadd.f32 %v2099_v24, %v670_v21  ;;  %v2440_v23 = vpop.f32.mrb[30].mxu0  ;;  %2465 = vmatprep.mubr.bf16.mxu1 %v705_v18 }
 0x37a   :  { %v682_v25 = vadd.f32 %v2440_v23, %v2099_v24  ;;  %v673_v27 = vpop.f32.mrb[31].mxu0  ;;  %2466 = vmatmul.mubr.bf16.gmra.mrb[24].mxu1 %v706_v17  ;;  %v699_v30 = vmax.f32 %v679_v20, 0.0 }
 0x37b   :  { %v674_v29 = vadd.f32 %v2099_v24, %v673_v27  ;;  %v697_v33 = vmax.f32 %v671_v22, 0.0 }
 0x37c   :  { %v700_v31 = vmax.f32 %v682_v25, 0.0 }
 0x37d   :  { %v698_v35 = vmax.f32 %v674_v29, 0.0 }
 0x37e   :  { %v708_v36 = vpack.c.bf16 %v700_v31, %v699_v30 }
 0x37f   :  { %v707_v37 = vpack.c.bf16 %v698_v35, %v697_v33 }
 0x381   :  { %2469 = vmatprep.mubr.bf16.mxu1 %v707_v37  ;;  %v3423_v37 = vld [vmem:[%s3615_s7] ss:$0 sm:$0xff] }
 0x382   :  { %2470 = vmatmul.mubr.bf16.gmra.mrb[28].mxu1 %v708_v36 }
 0x383   :  { %2521 = vmatprep.mubr.bf16.mxu1 %v3335_v4 }
 0x43d   :  { %v2459_v39 = vpop.f32.mrb[16].mxu1 }
 0x43e   :  { %v791_v41 = vpop.f32.mrb[17].mxu1 }
 0x43f   :  { %v2460_v42 = vpop.f32.mrb[18].mxu1 }
 0x440   :  { %v855_v43 = vpack.c.bf16 %v2460_v42, %v2459_v39  ;;  %v794_v45 = vpop.f32.mrb[19].mxu1 }
 0x441   :  { %v854_v47 = vpack.c.bf16 %v794_v45, %v791_v41  ;;  %v2768_v41 = vld [vmem:[#allocation11] sm:$0xff]  }
 0x443   :  { %2473 = vmatprep.subr.bf16.mxu0 %v854_v47 }
 0x444   :  { %2474 = vmatpush3.bf16.msra.mxu0 %v854_v47 }
 0x445   :  { %v2463_v48 = vpop.f32.mrb[20].mxu1  ;;  %2475 = vmatprep.subr.bf16.mxu0 %v855_v43 }
 0x446   :  { %v807_v24 = vpop.f32.mrb[21].mxu1 }
 0x447   :  { %v2464_v49 = vpop.f32.mrb[22].mxu1 }
 0x448   :  { %v857_v50 = vpack.c.bf16 %v2464_v49, %v2463_v48  ;;  %v810_v51 = vpop.f32.mrb[23].mxu1  ;;  %2476 = vmatpush3.bf16.msra.mxu0 %v855_v43 }
 0x449   :  { %v856_v52 = vpack.c.bf16 %v810_v51, %v807_v24 }
 0x44b   :  { %2477 = vmatprep.subr.bf16.mxu0 %v856_v52 }
 0x44c   :  { %2478 = vmatpush3.bf16.msra.mxu0 %v856_v52 }
 0x44d   :  { %v2467_v53 = vpop.f32.mrb[24].mxu1  ;;  %2479 = vmatprep.subr.bf16.mxu0 %v857_v50 }
 0x44e   :  { %v823_v54 = vpop.f32.mrb[25].mxu1 }
 0x44f   :  { %v2468_v55 = vpop.f32.mrb[26].mxu1 }
 0x450   :  { %v859_v56 = vpack.c.bf16 %v2468_v55, %v2467_v53  ;;  %v826_v57 = vpop.f32.mrb[27].mxu1  ;;  %2480 = vmatpush3.bf16.msra.mxu0 %v857_v50  ;;  %v2769_v50 = vld [vmem:[#allocation11 + $0x8] sm:$0xff]  }
 0x451   :  { %v858_v58 = vpack.c.bf16 %v826_v57, %v823_v54 }
 0x453   :  { %2481 = vmatprep.subr.bf16.mxu0 %v858_v58 }
 0x454   :  { %2482 = vmatpush3.bf16.msra.mxu0 %v858_v58  ;;  %v2770_v58 = vld [vmem:[#allocation11 + $0x10] sm:$0xff]  }
 0x455   :  { %v2471_v59 = vpop.f32.mrb[28].mxu1  ;;  %2483 = vmatprep.subr.bf16.mxu0 %v859_v56 }
 0x456   :  { %v839_v60 = vpop.f32.mrb[29].mxu1 }
 0x457   :  { %v2472_v61 = vpop.f32.mrb[30].mxu1 }
 0x458   :  { %v861_v62 = vpack.c.bf16 %v2472_v61, %v2471_v59  ;;  %v842_v63 = vpop.f32.mrb[31].mxu1  ;;  %2484 = vmatpush3.bf16.msra.mxu0 %v859_v56 }
 0x459   :  { %v860_v0 = vpack.c.bf16 %v842_v63, %v839_v60 }
 0x45b   :  { %2485 = vmatprep.subr.bf16.mxu0 %v860_v0 }
 0x45c   :  { %2486 = vmatpush3.bf16.msra.mxu0 %v860_v0 }
 0x45d   :  { %2487 = vmatprep.subr.bf16.mxu0 %v861_v62 }
 0x460   :  { %2488 = vmatpush3.bf16.msra.mxu0 %v861_v62 }
 0x461   :  { %2537 = vmatprep.subr.bf16.mxu0 %v2760_v1 }
 0x463   :  { %2490 = vmatmul.mubr.bf16.vlgmr.msra.gmra.mrb[32].mxu0 %v3339_v9 }
 0x464   :  { %2538 = vmatpush3.bf16.msra.mxu0 %v2760_v1  ;;  %2493 = vmatprep.mubr.bf16.mxu0 %v3341_v10  ;;  %v2771_v1 = vld [vmem:[#allocation11 + $0x18] sm:$0xff]  }
 0x465   :  { %2539 = vmatprep.subr.bf16.mxu0 %v2761_v2 }
 0x468   :  { %2540 = vmatpush3.bf16.msra.mxu0 %v2761_v2 }
 0x469   :  { %2541 = vmatprep.subr.bf16.mxu0 %v2762_v3 }
 0x46b   :  { %2494 = vmatmul.mubr.bf16.gmra.mrb[36].mxu0 %v3345_v11 }
 0x46c   :  { %2542 = vmatpush3.bf16.msra.mxu0 %v2762_v3  ;;  %2497 = vmatprep.mubr.bf16.mxu0 %v3347_v12 }
 0x46d   :  { %2543 = vmatprep.subr.bf16.mxu0 %v2763_v5 }
 0x470   :  { %2544 = vmatpush3.bf16.msra.mxu0 %v2763_v5 }
 0x471   :  { %2545 = vmatprep.subr.bf16.mxu0 %v2764_v6 }
 0x473   :  { %2498 = vmatmul.mubr.bf16.gmra.mrb[40].mxu0 %v3351_v13 }
 0x474   :  { %2546 = vmatpush3.bf16.msra.mxu0 %v2764_v6  ;;  %2501 = vmatprep.mubr.bf16.mxu0 %v3353_v14 }
 0x475   :  { %2547 = vmatprep.subr.bf16.mxu0 %v2765_v7 }
 0x478   :  { %2548 = vmatpush3.bf16.msra.mxu0 %v2765_v7 }
 0x479   :  { %2549 = vmatprep.subr.bf16.mxu0 %v2766_v8 }
 0x47b   :  { %2502 = vmatmul.mubr.bf16.gmra.mrb[44].mxu0 %v3357_v15 }
 0x47c   :  { %2550 = vmatpush3.bf16.msra.mxu0 %v2766_v8  ;;  %2553 = vmatprep.mubr.bf16.mxu0 %v3362_v28 }
 0x47d   :  { %2551 = vmatprep.subr.bf16.mxu0 %v2767_v16 }
 0x480   :  { %2552 = vmatpush3.bf16.msra.mxu0 %v2767_v16  ;;  %v2772_v16 = vld [vmem:[#allocation11 + $0x20] sm:$0xff]  }
 0x483   :  { %2554 = vmatmul.mubr.bf16.vlgmr.msra.gmra.mrb[48].mxu0 %v3360_v26 }
 0x484   :  { %2557 = vmatprep.mubr.bf16.mxu0 %v3370_v34 }
 0x48b   :  { %2558 = vmatmul.mubr.bf16.gmra.mrb[52].mxu0 %v3367_v32 }
 0x48c   :  { %2561 = vmatprep.mubr.bf16.mxu0 %v3378_v40 }
 0x493   :  { %2562 = vmatmul.mubr.bf16.gmra.mrb[56].mxu0 %v3375_v38 }
 0x494   :  { %2565 = vmatprep.mubr.bf16.mxu0 %v3386_v46 }
 0x49b   :  { %2566 = vmatmul.mubr.bf16.gmra.mrb[60].mxu0 %v3383_v44 }
 0x49c   :  { %2617 = vmatprep.mubr.bf16.mxu0 %v3335_v4 }
 0x536   :  { %v2491_v17 = vpop.f32.mrb[32].mxu0 }
 0x537   :  { %v896_v28 = vpop.f32.mrb[33].mxu0 }
 0x538   :  { %v2492_v18 = vpop.f32.mrb[34].mxu0 }
 0x539   :  { %v960_v19 = vpack.c.bf16 %v2492_v18, %v2491_v17  ;;  %v899_v20 = vpop.f32.mrb[35].mxu0 }
 0x53a   :  { %v959_v26 = vpack.c.bf16 %v899_v20, %v896_v28 }
 0x53c   :  { %2505 = vmatprep.subr.bf16.mxu1 %v959_v26 }
 0x53d   :  { %2506 = vmatpush3.bf16.msra.mxu1 %v959_v26 }
 0x53e   :  { %v2495_v34 = vpop.f32.mrb[36].mxu0  ;;  %2507 = vmatprep.subr.bf16.mxu1 %v960_v19 }
 0x53f   :  { %v912_v32 = vpop.f32.mrb[37].mxu0 }
 0x540   :  { %v2496_v40 = vpop.f32.mrb[38].mxu0 }
 0x541   :  { %v962_v21 = vpack.c.bf16 %v2496_v40, %v2495_v34  ;;  %v915_v38 = vpop.f32.mrb[39].mxu0  ;;  %2508 = vmatpush3.bf16.msra.mxu1 %v960_v19  ;;  %v2773_v34 = vld [vmem:[#allocation11 + $0x28] sm:$0xff]  }
 0x542   :  { %v961_v46 = vpack.c.bf16 %v915_v38, %v912_v32 }
 0x544   :  { %2509 = vmatprep.subr.bf16.mxu1 %v961_v46 }
 0x545   :  { %2510 = vmatpush3.bf16.msra.mxu1 %v961_v46 }
 0x546   :  { %v2499_v44 = vpop.f32.mrb[40].mxu0  ;;  %2511 = vmatprep.subr.bf16.mxu1 %v962_v21 }
 0x547   :  { %v928_v4 = vpop.f32.mrb[41].mxu0 }
 0x548   :  { %v2500_v22 = vpop.f32.mrb[42].mxu0 }
 0x549   :  { %v964_v23 = vpack.c.bf16 %v2500_v22, %v2499_v44  ;;  %v931_v25 = vpop.f32.mrb[43].mxu0  ;;  %2512 = vmatpush3.bf16.msra.mxu1 %v962_v21 }
 0x54a   :  { %v963_v27 = vpack.c.bf16 %v931_v25, %v928_v4  ;;  %v2774_v4 = vld [vmem:[#allocation11 + $0x30] sm:$0xff]  }
 0x54c   :  { %2513 = vmatprep.subr.bf16.mxu1 %v963_v27 }
 0x54d   :  { %2514 = vmatpush3.bf16.msra.mxu1 %v963_v27 }
 0x54e   :  { %v2503_v29 = vpop.f32.mrb[44].mxu0  ;;  %2515 = vmatprep.subr.bf16.mxu1 %v964_v23 }
 0x54f   :  { %v944_v30 = vpop.f32.mrb[45].mxu0 }
 0x550   :  { %v2504_v31 = vpop.f32.mrb[46].mxu0 }
 0x551   :  { %v966_v33 = vpack.c.bf16 %v2504_v31, %v2503_v29  ;;  %v947_v35 = vpop.f32.mrb[47].mxu0  ;;  %2516 = vmatpush3.bf16.msra.mxu1 %v964_v23  ;;  %v2775_v31 = vld [vmem:[#allocation11 + $0x38] sm:$0xff]  }
 0x552   :  { %v965_v36 = vpack.c.bf16 %v947_v35, %v944_v30 }
 0x554   :  { %2517 = vmatprep.subr.bf16.mxu1 %v965_v36 }
 0x555   :  { %2518 = vmatpush3.bf16.msra.mxu1 %v965_v36 }
 0x556   :  { %2519 = vmatprep.subr.bf16.mxu1 %v966_v33  ;;  %v2555_v39 = vpop.f32.mrb[48].mxu0 }
 0x557   :  { %v1201_v42 = vadd.f32 %v2555_v39, %v3423_v37  ;;  %v1192_v43 = vpop.f32.mrb[49].mxu0 }
 0x558   :  { %v1193_v45 = vadd.f32 %v3423_v37, %v1192_v43  ;;  %v2556_v47 = vpop.f32.mrb[50].mxu0  ;;  %v2777_v43 = vld [vmem:[#allocation13 + $0x8] sm:$0xff]  }
 0x559   :  { %v1204_v48 = vadd.f32 %v2556_v47, %v3423_v37  ;;  %2520 = vmatpush3.bf16.msra.mxu1 %v966_v33  ;;  %v1195_v24 = vpop.f32.mrb[51].mxu0  ;;  %v1257_v51 = vmax.f32 %v1201_v42, 0.0  ;;  %v2776_v42 = vld [vmem:[#allocation13] sm:$0xff]   ;;  %v2781_v47 = vld [vmem:[#allocation13 + $0x28] sm:$0xff]  }
 0x55a   :  { %v1196_v49 = vadd.f32 %v3423_v37, %v1195_v24  ;;  %2569 = vmatprep.subr.bf16.mxu1 %v2768_v41  ;;  %v1255_v53 = vmax.f32 %v1193_v45, 0.0  ;;  %v2779_v45 = vld [vmem:[#allocation13 + $0x18] sm:$0xff]  }
 0x55b   :  { %v1258_v52 = vmax.f32 %v1204_v48, 0.0  ;;  %v2782_v48 = vld [vmem:[#allocation13 + $0x30] sm:$0xff]   ;;  %v2783_v24 = vld [vmem:[#allocation13 + $0x38] sm:$0xff]  }
 0x55c   :  { %v1256_v54 = vmax.f32 %v1196_v49, 0.0  ;;  %2522 = vmatmul.mubr.bf16.vlgmr.msra.gmra.mrb[32].mxu1 %v3339_v9  ;;  %v3454_v49 = vld [vmem:[#allocation14] sm:$0xff]  }
 0x55d   :  { %v3430_v55 = vpack.c.bf16 %v1258_v52, %v1257_v51  ;;  %2570 = vmatpush3.bf16.msra.mxu1 %v2768_v41  ;;  %2525 = vmatprep.mubr.bf16.mxu1 %v3341_v10 }
 0x55e   :  { %v3433_v56 = vpack.c.bf16 %v1256_v54, %v1255_v53  ;;  %v2559_v57 = vpop.f32.mrb[52].mxu0  ;;  %2571 = vmatprep.subr.bf16.mxu1 %v2769_v50 }
 0x55f   :  { %v1217_v59 = vadd.f32 %v2559_v57, %v3423_v37  ;;  %v1208_v60 = vpop.f32.mrb[53].mxu0 }
 0x560   :  { %v1209_v61 = vadd.f32 %v3423_v37, %v1208_v60  ;;  %v2560_v62 = vpop.f32.mrb[54].mxu0 }
 0x561   :  { %v1220_v63 = vadd.f32 %v2560_v62, %v3423_v37  ;;  %v1211_v0 = vpop.f32.mrb[55].mxu0  ;;  %2572 = vmatpush3.bf16.msra.mxu1 %v2769_v50  ;;  %v1261_v10 = vmax.f32 %v1217_v59, 0.0  ;;  %v2116_v50 = vld [vmem:[%s3613_s5] ss:$0 sm:$0xff] }
 0x562   :  { %v1212_v9 = vadd.f32 %v3423_v37, %v1211_v0  ;;  %2573 = vmatprep.subr.bf16.mxu1 %v2770_v58  ;;  %v1259_v3 = vmax.f32 %v1209_v61, 0.0  ;;  %v3460_v0 = vld [vmem:[#allocation14 + $0x8] sm:$0xff]  }
 0x563   :  { %v1262_v2 = vmax.f32 %v1220_v63, 0.0 }
 0x564   :  { %v1260_v5 = vmax.f32 %v1212_v9, 0.0  ;;  %2526 = vmatmul.mubr.bf16.gmra.mrb[36].mxu1 %v3345_v11 }
 0x565   :  { %v1274_v6 = vpack.c.bf16 %v1262_v2, %v1261_v10  ;;  %2574 = vmatpush3.bf16.msra.mxu1 %v2770_v58  ;;  %2529 = vmatprep.mubr.bf16.mxu1 %v3347_v12 }
 0x566   :  { %v1273_v7 = vpack.c.bf16 %v1260_v5, %v1259_v3  ;;  %v2563_v8 = vpop.f32.mrb[56].mxu0  ;;  %2575 = vmatprep.subr.bf16.mxu1 %v2771_v1 }
 0x567   :  { %v1233_v17 = vadd.f32 %v2563_v8, %v3423_v37  ;;  %v1224_v28 = vpop.f32.mrb[57].mxu0 }
 0x568   :  { %v1225_v18 = vadd.f32 %v3423_v37, %v1224_v28  ;;  %v2564_v19 = vpop.f32.mrb[58].mxu0 }
 0x569   :  { %v1236_v20 = vadd.f32 %v2564_v19, %v3423_v37  ;;  %v1227_v26 = vpop.f32.mrb[59].mxu0  ;;  %2576 = vmatpush3.bf16.msra.mxu1 %v2771_v1  ;;  %v1265_v32 = vmax.f32 %v1233_v17, 0.0 }
 0x56a   :  { %v1228_v11 = vadd.f32 %v3423_v37, %v1227_v26  ;;  %2577 = vmatprep.subr.bf16.mxu1 %v2772_v16  ;;  %v1263_v40 = vmax.f32 %v1225_v18, 0.0 }
 0x56b   :  { %v1266_v12 = vmax.f32 %v1236_v20, 0.0 }
 0x56c   :  { %v1264_v21 = vmax.f32 %v1228_v11, 0.0  ;;  %2530 = vmatmul.mubr.bf16.gmra.mrb[40].mxu1 %v3351_v13 }
 0x56d   :  { %v1276_v38 = vpack.c.bf16 %v1266_v12, %v1265_v32  ;;  %2578 = vmatpush3.bf16.msra.mxu1 %v2772_v16  ;;  %2533 = vmatprep.mubr.bf16.mxu1 %v3353_v14 }
 0x56e   :  { %v1275_v46 = vpack.c.bf16 %v1264_v21, %v1263_v40  ;;  %v2567_v44 = vpop.f32.mrb[60].mxu0  ;;  %2579 = vmatprep.subr.bf16.mxu1 %v2773_v34 }
 0x56f   :  { %v1249_v22 = vadd.f32 %v2567_v44, %v3423_v37  ;;  %v1240_v23 = vpop.f32.mrb[61].mxu0 }
 0x570   :  { %v1241_v25 = vadd.f32 %v3423_v37, %v1240_v23  ;;  %v2568_v27 = vpop.f32.mrb[62].mxu0 }
 0x571   :  { %v1252_v29 = vadd.f32 %v2568_v27, %v3423_v37  ;;  %v1243_v30 = vpop.f32.mrb[63].mxu0  ;;  %2580 = vmatpush3.bf16.msra.mxu1 %v2773_v34  ;;  %v1269_v33 = vmax.f32 %v1249_v22, 0.0 }
 0x572   :  { %v1244_v13 = vadd.f32 %v3423_v37, %v1243_v30  ;;  %2581 = vmatprep.subr.bf16.mxu1 %v2774_v4  ;;  %v1267_v35 = vmax.f32 %v1241_v25, 0.0  ;;  %v2778_v37 = vld [vmem:[#allocation13 + $0x10] sm:$0xff]  }
 0x573   :  { %v1270_v14 = vmax.f32 %v1252_v29, 0.0 }
 0x574   :  { %v1268_v36 = vmax.f32 %v1244_v13, 0.0  ;;  %2534 = vmatmul.mubr.bf16.gmra.mrb[44].mxu1 %v3357_v15  ;;  %v2780_v15 = vld [vmem:[#allocation13 + $0x20] sm:$0xff]  }
 0x575   :  { %v1278_v39 = vpack.c.bf16 %v1270_v14, %v1269_v33  ;;  %2582 = vmatpush3.bf16.msra.mxu1 %v2774_v4  ;;  %2585 = vmatprep.mubr.bf16.mxu1 %v3433_v56 }
 0x576   :  { %v1277_v41 = vpack.c.bf16 %v1268_v36, %v1267_v35  ;;  %2583 = vmatprep.subr.bf16.mxu1 %v2775_v31 }
 0x579   :  { %2584 = vmatpush3.bf16.msra.mxu1 %v2775_v31 }
 0x57a   :  { %2633 = vmatprep.subr.bf16.mxu1 %v2776_v42 }
 0x57c   :  { %2586 = vmatmul.mubr.bf16.vlgmr.msra.gmra.mrb[48].mxu1 %v3430_v55 }
 0x57d   :  { %2589 = vmatprep.mubr.bf16.mxu1 %v1273_v7  ;;  %2634 = vmatpush3.bf16.msra.mxu1 %v2776_v42 }
 0x57e   :  { %2635 = vmatprep.subr.bf16.mxu1 %v2777_v43 }
 0x581   :  { %2636 = vmatpush3.bf16.msra.mxu1 %v2777_v43 }
 0x582   :  { %2637 = vmatprep.subr.bf16.mxu1 %v2778_v37 }
 0x584   :  { %2590 = vmatmul.mubr.bf16.gmra.mrb[52].mxu1 %v1274_v6 }
 0x585   :  { %2593 = vmatprep.mubr.bf16.mxu1 %v1275_v46  ;;  %2638 = vmatpush3.bf16.msra.mxu1 %v2778_v37 }
 0x586   :  { %2639 = vmatprep.subr.bf16.mxu1 %v2779_v45 }
 0x589   :  { %2640 = vmatpush3.bf16.msra.mxu1 %v2779_v45 }
 0x58a   :  { %2641 = vmatprep.subr.bf16.mxu1 %v2780_v15 }
 0x58c   :  { %2594 = vmatmul.mubr.bf16.gmra.mrb[56].mxu1 %v1276_v38 }
 0x58d   :  { %2597 = vmatprep.mubr.bf16.mxu1 %v1277_v41  ;;  %2642 = vmatpush3.bf16.msra.mxu1 %v2780_v15 }
 0x58e   :  { %2643 = vmatprep.subr.bf16.mxu1 %v2781_v47 }
 0x591   :  { %2644 = vmatpush3.bf16.msra.mxu1 %v2781_v47 }
 0x592   :  { %2645 = vmatprep.subr.bf16.mxu1 %v2782_v48 }
 0x594   :  { %2598 = vmatmul.mubr.bf16.gmra.mrb[60].mxu1 %v1278_v39 }
 0x595   :  { %2646 = vmatpush3.bf16.msra.mxu1 %v2782_v48 }
 0x596   :  { %2647 = vmatprep.subr.bf16.mxu1 %v2783_v24 }
 0x599   :  { %2648 = vmatpush3.bf16.msra.mxu1 %v2783_v24 }
 0x59a   :  { %2697 = vmatprep.subr.bf16.mxu1 %v3454_v49 }
 0x62f   :  { %v2523_v51 = vpop.f32.mrb[32].mxu1 }
 0x630   :  { %v1016_v52 = vadd.f32 %v2523_v51, %v2116_v50  ;;  %v1007_v53 = vpop.f32.mrb[33].mxu1 }
 0x631   :  { %v1008_v54 = vadd.f32 %v2116_v50, %v1007_v53  ;;  %v2524_v55 = vpop.f32.mrb[34].mxu1  ;;  %v2824_v53 = vld [vmem:[#allocation2 + $0x8] sm:$0xff]  }
 0x632   :  { %1985 = vst [vmem:[#allocation16 + $0x10] sm:$0xff] %v1016_v52  ;;  %v1019_v56 = vadd.f32 %v2524_v55, %v2116_v50  ;;  %v1010_v57 = vpop.f32.mrb[35].mxu1  ;;  %v2826_v55 = vld [vmem:[#allocation2 + $0x18] sm:$0xff]  }
 0x633   :  { %1983 = vst [vmem:[#allocation16] sm:$0xff] %v1008_v54  ;;  %v1011_v58 = vadd.f32 %v2116_v50, %v1010_v57  ;;  %v2828_v57 = vld [vmem:[#allocation2 + $0x28] sm:$0xff]  }
 0x634   :  { %v1552_v59 = vpack.c.bf16 %v1019_v56, %v1016_v52  ;;  %1986 = vst [vmem:[#allocation16 + $0x18] sm:$0xff] %v1019_v56  ;;  %v2827_v56 = vld [vmem:[#allocation2 + $0x20] sm:$0xff]  }
 0x635   :  { %v1551_v60 = vpack.c.bf16 %v1011_v58, %v1008_v54  ;;  %1984 = vst [vmem:[#allocation16 + $0x8] sm:$0xff] %v1011_v58  ;;  %v2825_v54 = vld [vmem:[#allocation2 + $0x10] sm:$0xff]  }
 0x636   :  { %v2829_v58 = vld [vmem:[#allocation2 + $0x30] sm:$0xff]  }
 0x637   :  { %v2527_v61 = vpop.f32.mrb[36].mxu1  ;;  %2649 = vmatprep.mubr.bf16.mxu1 %v1551_v60  ;;  %v2830_v60 = vld [vmem:[#allocation2 + $0x38] sm:$0xff]  }
 0x638   :  { %v1032_v62 = vadd.f32 %v2527_v61, %v2116_v50  ;;  %v1023_v63 = vpop.f32.mrb[37].mxu1  ;;  %2650 = vmatmul.mubr.bf16.vlgmr.msra.gmra.mrb[64].mxu1 %v1552_v59  ;;  %v2786_v59 = vld [vmem:[#allocation14 + $0x10] sm:$0xff]   ;;  %v2788_v61 = vld [vmem:[#allocation14 + $0x20] sm:$0xff]  }
 0x639   :  { %v1024_v9 = vadd.f32 %v2116_v50, %v1023_v63  ;;  %v2528_v1 = vpop.f32.mrb[38].mxu1  ;;  %2705 = vmatpush3.bf16.msra.mxu1 %v3454_v49  ;;  %v2790_v63 = vld [vmem:[#allocation14 + $0x30] sm:$0xff]  }
 0x63a   :  { %1989 = vst [vmem:[#allocation16 + $0x30] sm:$0xff] %v1032_v62  ;;  %v1035_v10 = vadd.f32 %v2528_v1, %v2116_v50  ;;  %v1026_v2 = vpop.f32.mrb[39].mxu1  ;;  %2698 = vmatprep.subr.bf16.mxu1 %v3460_v0 }
 0x63b   :  { %1987 = vst [vmem:[#allocation16 + $0x20] sm:$0xff] %v1024_v9  ;;  %v1027_v3 = vadd.f32 %v2116_v50, %v1026_v2 }
 0x63c   :  { %v1554_v5 = vpack.c.bf16 %v1035_v10, %v1032_v62  ;;  %1990 = vst [vmem:[#allocation16 + $0x38] sm:$0xff] %v1035_v10  ;;  %v2789_v62 = vld [vmem:[#allocation14 + $0x28] sm:$0xff]  }
 0x63d   :  { %v1553_v6 = vpack.c.bf16 %v1027_v3, %v1024_v9  ;;  %1988 = vst [vmem:[#allocation16 + $0x28] sm:$0xff] %v1027_v3  ;;  %2706 = vmatpush3.bf16.msra.mxu1 %v3460_v0  ;;  %v3472_v9 = vld [vmem:[%s3619_s11] ss:$0 sm:$0xff] }
 0x63e   :  { %2699 = vmatprep.subr.bf16.mxu1 %v2786_v59 }
 0x63f   :  { %v2531_v7 = vpop.f32.mrb[40].mxu1  ;;  %2653 = vmatprep.mubr.bf16.mxu1 %v1553_v6 }
 0x640   :  { %v1048_v8 = vadd.f32 %v2531_v7, %v2116_v50  ;;  %v1039_v16 = vpop.f32.mrb[41].mxu1  ;;  %2654 = vmatmul.mubr.bf16.gmra.mrb[68].mxu1 %v1554_v5 }
 0x641   :  { %v1040_v17 = vadd.f32 %v2116_v50, %v1039_v16  ;;  %v2532_v28 = vpop.f32.mrb[42].mxu1  ;;  %2707 = vmatpush3.bf16.msra.mxu1 %v2786_v59 }
 0x642   :  { %1993 = vst [vmem:[#allocation16 + $0x50] sm:$0xff] %v1048_v8  ;;  %v1051_v18 = vadd.f32 %v2532_v28, %v2116_v50  ;;  %v1042_v19 = vpop.f32.mrb[43].mxu1 }
 0x643   :  { %1991 = vst [vmem:[#allocation16 + $0x40] sm:$0xff] %v1040_v17  ;;  %v1043_v20 = vadd.f32 %v2116_v50, %v1042_v19 }
 0x644   :  { %v1556_v26 = vpack.c.bf16 %v1051_v18, %v1048_v8  ;;  %1994 = vst [vmem:[#allocation16 + $0x58] sm:$0xff] %v1051_v18 }
 0x645   :  { %v1555_v11 = vpack.c.bf16 %v1043_v20, %v1040_v17  ;;  %1992 = vst [vmem:[#allocation16 + $0x48] sm:$0xff] %v1043_v20 }
 0x647   :  { %v2535_v34 = vpop.f32.mrb[44].mxu1  ;;  %2657 = vmatprep.mubr.bf16.mxu1 %v1555_v11 }
 0x648   :  { %v1064_v32 = vadd.f32 %v2535_v34, %v2116_v50  ;;  %v1055_v12 = vpop.f32.mrb[45].mxu1  ;;  %2658 = vmatmul.mubr.bf16.gmra.mrb[72].mxu1 %v1556_v26 }
 0x649   :  { %v1056_v40 = vadd.f32 %v2116_v50, %v1055_v12  ;;  %v2536_v21 = vpop.f32.mrb[46].mxu1 }
 0x64a   :  { %1997 = vst [vmem:[#allocation16 + $0x70] sm:$0xff] %v1064_v32  ;;  %v1067_v38 = vadd.f32 %v2536_v21, %v2116_v50  ;;  %v1058_v46 = vpop.f32.mrb[47].mxu1 }
 0x64b   :  { %1995 = vst [vmem:[#allocation16 + $0x60] sm:$0xff] %v1056_v40  ;;  %v1059_v44 = vadd.f32 %v2116_v50, %v1058_v46 }
 0x64c   :  { %v1558_v4 = vpack.c.bf16 %v1067_v38, %v1064_v32  ;;  %1998 = vst [vmem:[#allocation16 + $0x78] sm:$0xff] %v1067_v38 }
 0x64d   :  { %v1557_v22 = vpack.c.bf16 %v1059_v44, %v1056_v40  ;;  %1996 = vst [vmem:[#allocation16 + $0x68] sm:$0xff] %v1059_v44 }
 0x64f   :  { %v2587_v23 = vpop.f32.mrb[48].mxu1  ;;  %2661 = vmatprep.mubr.bf16.mxu1 %v1557_v22 }
 0x650   :  { %v1361_v25 = vpop.f32.mrb[49].mxu1  ;;  %2662 = vmatmul.mubr.bf16.gmra.mrb[76].mxu1 %v1558_v4 }
 0x651   :  { %v2588_v27 = vpop.f32.mrb[50].mxu1 }
 0x652   :  { %v1425_v29 = vpack.c.bf16 %v2588_v27, %v2587_v23  ;;  %v1364_v30 = vpop.f32.mrb[51].mxu1 }
 0x653   :  { %v1424_v13 = vpack.c.bf16 %v1364_v30, %v1361_v25 }
 0x655   :  { %2601 = vmatprep.subr.bf16.mxu0 %v1424_v13 }
 0x656   :  { %2602 = vmatpush3.bf16.msra.mxu0 %v1424_v13 }
 0x657   :  { %v2591_v31 = vpop.f32.mrb[52].mxu1  ;;  %2603 = vmatprep.subr.bf16.mxu0 %v1425_v29 }
 0x658   :  { %v1377_v33 = vpop.f32.mrb[53].mxu1 }
 0x659   :  { %v2592_v14 = vpop.f32.mrb[54].mxu1 }
 0x65a   :  { %v1427_v35 = vpack.c.bf16 %v2592_v14, %v2591_v31  ;;  %v1380_v36 = vpop.f32.mrb[55].mxu1  ;;  %2604 = vmatpush3.bf16.msra.mxu0 %v1425_v29 }
 0x65b   :  { %v1426_v39 = vpack.c.bf16 %v1380_v36, %v1377_v33 }
 0x65d   :  { %2605 = vmatprep.subr.bf16.mxu0 %v1426_v39 }
 0x65e   :  { %2606 = vmatpush3.bf16.msra.mxu0 %v1426_v39 }
 0x65f   :  { %v2595_v41 = vpop.f32.mrb[56].mxu1  ;;  %2607 = vmatprep.subr.bf16.mxu0 %v1427_v35 }
 0x660   :  { %v1393_v42 = vpop.f32.mrb[57].mxu1 }
 0x661   :  { %v2596_v43 = vpop.f32.mrb[58].mxu1 }
 0x662   :  { %v1429_v37 = vpack.c.bf16 %v2596_v43, %v2595_v41  ;;  %v1396_v45 = vpop.f32.mrb[59].mxu1  ;;  %2608 = vmatpush3.bf16.msra.mxu0 %v1427_v35 }
 0x663   :  { %v1428_v15 = vpack.c.bf16 %v1396_v45, %v1393_v42 }
 0x665   :  { %2609 = vmatprep.subr.bf16.mxu0 %v1428_v15 }
 0x666   :  { %2610 = vmatpush3.bf16.msra.mxu0 %v1428_v15 }
 0x667   :  { %v2599_v47 = vpop.f32.mrb[60].mxu1  ;;  %2611 = vmatprep.subr.bf16.mxu0 %v1429_v37 }
 0x668   :  { %v1409_v48 = vpop.f32.mrb[61].mxu1 }
 0x669   :  { %v2600_v24 = vpop.f32.mrb[62].mxu1 }
 0x66a   :  { %v1431_v50 = vpack.c.bf16 %v2600_v24, %v2599_v47  ;;  %v1412_v51 = vpop.f32.mrb[63].mxu1  ;;  %2612 = vmatpush3.bf16.msra.mxu0 %v1429_v37 }
 0x66b   :  { %v1430_v52 = vpack.c.bf16 %v1412_v51, %v1409_v48 }
 0x66d   :  { %2613 = vmatprep.subr.bf16.mxu0 %v1430_v52 }
 0x66e   :  { %2614 = vmatpush3.bf16.msra.mxu0 %v1430_v52 }
 0x66f   :  { %2615 = vmatprep.subr.bf16.mxu0 %v1431_v50 }
 0x672   :  { %2616 = vmatpush3.bf16.msra.mxu0 %v1431_v50 }
 0x673   :  { %2665 = vmatprep.subr.bf16.mxu0 %v3454_v49 }
 0x675   :  { %2618 = vmatmul.mubr.bf16.vlgmr.msra.gmra.mrb[64].mxu0 %v2824_v53 }
 0x676   :  { %2666 = vmatpush3.bf16.msra.mxu0 %v3454_v49  ;;  %2621 = vmatprep.mubr.bf16.mxu0 %v2825_v54  ;;  %v2787_v49 = vld [vmem:[#allocation14 + $0x18] sm:$0xff]  }
 0x677   :  { %2667 = vmatprep.subr.bf16.mxu0 %v3460_v0  ;;  %2700 = vmatprep.subr.bf16.mxu1 %v2787_v49 }
 0x678   :  { %2708 = vmatpush3.bf16.msra.mxu1 %v2787_v49 }
 0x679   :  { %2701 = vmatprep.subr.bf16.mxu1 %v2788_v61 }
 0x67a   :  { %2668 = vmatpush3.bf16.msra.mxu0 %v3460_v0  ;;  %v2791_v0 = vld [vmem:[#allocation14 + $0x38] sm:$0xff]  }
 0x67b   :  { %2669 = vmatprep.subr.bf16.mxu0 %v2786_v59 }
 0x67c   :  { %2709 = vmatpush3.bf16.msra.mxu1 %v2788_v61 }
 0x67d   :  { %2622 = vmatmul.mubr.bf16.gmra.mrb[68].mxu0 %v2826_v55  ;;  %2702 = vmatprep.subr.bf16.mxu1 %v2789_v62 }
 0x67e   :  { %2625 = vmatprep.mubr.bf16.mxu0 %v2827_v56  ;;  %2670 = vmatpush3.bf16.msra.mxu0 %v2786_v59 }
 0x67f   :  { %2671 = vmatprep.subr.bf16.mxu0 %v2787_v49 }
 0x680   :  { %2710 = vmatpush3.bf16.msra.mxu1 %v2789_v62 }
 0x681   :  { %2703 = vmatprep.subr.bf16.mxu1 %v2790_v63 }
 0x682   :  { %2672 = vmatpush3.bf16.msra.mxu0 %v2787_v49 }
 0x683   :  { %2673 = vmatprep.subr.bf16.mxu0 %v2788_v61 }
 0x684   :  { %2711 = vmatpush3.bf16.msra.mxu1 %v2790_v63 }
 0x685   :  { %2626 = vmatmul.mubr.bf16.gmra.mrb[72].mxu0 %v2828_v57  ;;  %2704 = vmatprep.subr.bf16.mxu1 %v2791_v0 }
 0x686   :  { %2629 = vmatprep.mubr.bf16.mxu0 %v2829_v58  ;;  %2674 = vmatpush3.bf16.msra.mxu0 %v2788_v61 }
 0x687   :  { %2675 = vmatprep.subr.bf16.mxu0 %v2789_v62 }
 0x688   :  { %2712 = vmatpush3.bf16.msra.mxu1 %v2791_v0 }
 0x68a   :  { %2676 = vmatpush3.bf16.msra.mxu0 %v2789_v62 }
 0x68b   :  { %2677 = vmatprep.subr.bf16.mxu0 %v2790_v63 }
 0x68d   :  { %2630 = vmatmul.mubr.bf16.gmra.mrb[76].mxu0 %v2830_v60 }
 0x68e   :  { %2678 = vmatpush3.bf16.msra.mxu0 %v2790_v63 }
 0x68f   :  { %2679 = vmatprep.subr.bf16.mxu0 %v2791_v0 }
 0x692   :  { %2680 = vmatpush3.bf16.msra.mxu0 %v2791_v0 }
 0x70b   :  { %v2651_v1 = vpop.f32.mrb[64].mxu1 }
 0x70c   :  { %v1657_v10 = vadd.f32 %v2651_v1, %v3472_v9  ;;  %v1648_v2 = vpop.f32.mrb[65].mxu1 }
 0x70d   :  { %v3476_v3 = vadd.f32 %v3472_v9, %v1648_v2  ;;  %v2652_v5 = vpop.f32.mrb[66].mxu1 }
 0x70e   :  { %v1729_v6 = vmin.f32 %v1657_v10, 0.0  ;;  %v1660_v7 = vadd.f32 %v2652_v5, %v3472_v9  ;;  %v1651_v8 = vpop.f32.mrb[67].mxu1  ;;  %vm1713_vm0 = vcmp.gt.f32.partialorder %v1657_v10, 0.0 }
 0x70f   :  { %v1727_v16 = vmin.f32 %v3476_v3, 0.0  ;;  %v3481_v17 = vadd.f32 %v3472_v9, %v1651_v8  ;;  %vm1711_vm1 = vcmp.gt.f32.partialorder %v3476_v3, 0.0 }
 0x710   :  { %v1747_v28 = vmul.f32 1.442695, %v1729_v6  ;;  %v1730_v18 = vmin.f32 %v1660_v7, 0.0  ;;  %vm1714_vm2 = vcmp.gt.f32.partialorder %v1660_v7, 0.0 }
 0x711   :  { %v1743_v19 = vmul.f32 1.442695, %v1727_v16  ;;  %v1728_v20 = vmin.f32 %v3481_v17, 0.0  ;;  %vm1712_vm3 = vcmp.gt.f32.partialorder %v3481_v17, 0.0 }
 0x712   :  { %2792 = vpow2.f32 %v1747_v28  ;;  %v1749_v26 = vmul.f32 1.442695, %v1730_v18 }
 0x713   :  { %2794 = vpow2.f32 %v1743_v19  ;;  %v1745_v11 = vmul.f32 1.442695, %v1728_v20  ;;  %v2655_v34 = vpop.f32.mrb[68].mxu1 }
 0x714   :  { %2796 = vpow2.f32 %v1749_v26  ;;  %v3485_v32 = vadd.f32 %v2655_v34, %v3472_v9  ;;  %v1664_v12 = vpop.f32.mrb[69].mxu1 }
 0x715   :  { %2798 = vpow2.f32 %v1745_v11  ;;  %v3488_v40 = vadd.f32 %v3472_v9, %v1664_v12  ;;  %v2656_v21 = vpop.f32.mrb[70].mxu1 }
 0x716   :  { %v1733_v38 = vmin.f32 %v3485_v32, 0.0  ;;  %v3492_v46 = vadd.f32 %v2656_v21, %v3472_v9  ;;  %v1667_v44 = vpop.f32.mrb[71].mxu1  ;;  %vm1717_vm4 = vcmp.gt.f32.partialorder %v3485_v32, 0.0 }
 0x717   :  { %v1731_v4 = vmin.f32 %v3488_v40, 0.0  ;;  %v3496_v22 = vadd.f32 %v3472_v9, %v1667_v44  ;;  %vm1715_vm5 = vcmp.gt.f32.partialorder %v3488_v40, 0.0 }
 0x718   :  { %v1755_v23 = vmul.f32 1.442695, %v1733_v38  ;;  %v1734_v25 = vmin.f32 %v3492_v46, 0.0  ;;  %vm1718_vm6 = vcmp.gt.f32.partialorder %v3492_v46, 0.0 }
 0x719   :  { %v1751_v27 = vmul.f32 1.442695, %v1731_v4  ;;  %v1732_v29 = vmin.f32 %v3496_v22, 0.0  ;;  %vm1716_vm7 = vcmp.gt.f32.partialorder %v3496_v22, 0.0 }
 0x71a   :  { %2800 = vpow2.f32 %v1755_v23  ;;  %v1757_v30 = vmul.f32 1.442695, %v1734_v25 }
 0x71b   :  { %2802 = vpow2.f32 %v1751_v27  ;;  %v1753_v13 = vmul.f32 1.442695, %v1732_v29  ;;  %v2659_v31 = vpop.f32.mrb[72].mxu1 }
 0x71c   :  { %v2793_v33 = vpop.eup %2792  ;;  %2804 = vpow2.f32 %v1757_v30  ;;  %v3501_v14 = vadd.f32 %v2659_v31, %v3472_v9  ;;  %v1680_v35 = vpop.f32.mrb[73].mxu1 }
 0x71d   :  { %v2795_v36 = vpop.eup %2794  ;;  %v2146_v39 = vadd.f32 -1.0, %v2793_v33  ;;  %2806 = vpow2.f32 %v1753_v13  ;;  %v3504_v41 = vadd.f32 %v3472_v9, %v1680_v35  ;;  %v2660_v42 = vpop.f32.mrb[74].mxu1 }
 0x71e   :  { %v2797_v43 = vpop.eup %2796  ;;  %v2144_v37 = vadd.f32 -1.0, %v2795_v36  ;;  %v1737_v45 = vmin.f32 %v3501_v14, 0.0  ;;  %v3509_v15 = vadd.f32 %v2660_v42, %v3472_v9  ;;  %v1683_v47 = vpop.f32.mrb[75].mxu1  ;;  %vm1721_vm8 = vcmp.gt.f32.partialorder %v3501_v14, 0.0 }
 0x71f   :  { %v2799_v48 = vpop.eup %2798  ;;  %v2147_v24 = vadd.f32 -1.0, %v2797_v43  ;;  %v1735_v50 = vmin.f32 %v3504_v41, 0.0  ;;  %v1793_v51 = vsel %vm1713_vm0, %v1657_v10, %v2146_v39  ;;  %v3516_v57 = vadd.f32 %v3472_v9, %v1683_v47 }
 0x720   :  { %v2145_v52 = vadd.f32 -1.0, %v2799_v48  ;;  %v1763_v53 = vmul.f32 1.442695, %v1737_v45  ;;  %v1738_v54 = vmin.f32 %v3509_v15, 0.0  ;;  %v1791_v58 = vsel %vm1711_vm1, %v3476_v3, %v2144_v37 }
 0x721   :  { %v1794_v55 = vsel %vm1714_vm2, %v1660_v7, %v2147_v24  ;;  %v1759_v56 = vmul.f32 1.442695, %v1735_v50  ;;  %v1736_v61 = vmin.f32 %v3516_v57, 0.0  ;;  %vm1722_vm9 = vcmp.gt.f32.partialorder %v3509_v15, 0.0 }
 0x722   :  { %v1824_v59 = vpack.c.bf16 %v1794_v55, %v1793_v51  ;;  %2808 = vpow2.f32 %v1763_v53  ;;  %v1765_v60 = vmul.f32 1.442695, %v1738_v54  ;;  %v1792_v49 = vsel %vm1712_vm3, %v3481_v17, %v2145_v52 }
 0x723   :  { %2810 = vpow2.f32 %v1759_v56  ;;  %v2663_v62 = vpop.f32.mrb[76].mxu1  ;;  %v1823_v63 = vpack.c.bf16 %v1792_v49, %v1791_v58  ;;  %v1761_v3 = vmul.f32 1.442695, %v1736_v61  ;;  %vm1719_vm10 = vcmp.gt.f32.partialorder %v3504_v41, 0.0 }
 0x724   :  { %v2801_v0 = vpop.eup %2800  ;;  %2812 = vpow2.f32 %v1765_v60  ;;  %v3524_v1 = vadd.f32 %v2663_v62, %v3472_v9  ;;  %v1696_v10 = vpop.f32.mrb[77].mxu1  ;;  %vm1720_vm11 = vcmp.gt.f32.partialorder %v3516_v57, 0.0 }
 0x725   :  { %v2803_v2 = vpop.eup %2802  ;;  %v3528_v5 = vadd.f32 %v3472_v9, %v1696_v10  ;;  %v2664_v6 = vpop.f32.mrb[78].mxu1  ;;  %2681 = vmatprep.mubr.bf16.mxu0 %v1823_v63  ;;  %v2150_v19 = vadd.f32 -1.0, %v2801_v0  ;;  %2814 = vpow2.f32 %v1761_v3 }
 0x726   :  { %v2805_v7 = vpop.eup %2804  ;;  %v2148_v8 = vadd.f32 -1.0, %v2803_v2  ;;  %v1741_v16 = vmin.f32 %v3524_v1, 0.0  ;;  %v1708_v17 = vadd.f32 %v2664_v6, %v3472_v9  ;;  %v1699_v28 = vpop.f32.mrb[79].mxu1  ;;  %2682 = vmatmul.mubr.bf16.vlgmr.msra.gmra.mrb[80].mxu0 %v1824_v59  ;;  %vm1725_vm12 = vcmp.gt.f32.partialorder %v3524_v1, 0.0  ;;  %v2134_v59 = vld [vmem:[%s3617_s9] ss:$0 sm:$0xff] }
 0x727   :  { %v2807_v18 = vpop.eup %2806  ;;  %v2151_v20 = vadd.f32 -1.0, %v2805_v7  ;;  %v1739_v26 = vmin.f32 %v3528_v5, 0.0  ;;  %v1700_v38 = vadd.f32 %v3472_v9, %v1699_v28  ;;  %v1797_v30 = vsel %vm1717_vm4, %v3485_v32, %v2150_v19  ;;  %s3097_s9 = smov [#allocation17]  }
 0x728   :  { %v2149_v11 = vadd.f32 -1.0, %v2807_v18  ;;  %v1771_v34 = vmul.f32 1.442695, %v1741_v16  ;;  %v1742_v12 = vmin.f32 %v1708_v17, 0.0  ;;  %v1795_v44 = vsel %vm1715_vm5, %v3488_v40, %v2148_v8  ;;  %s2048_s0 = sshll.u32 %s3097_s9, 4  ;;  %s2049_s0 = int_to_ptr.vmem [resolvable:$true] %s2048_s0 }
 0x729   :  { %v1767_v21 = vmul.f32 1.442695, %v1739_v26  ;;  %v1798_v25 = vsel %vm1718_vm6, %v3492_v46, %v2151_v20  ;;  %v1740_v27 = vmin.f32 %v1700_v38, 0.0  ;;  %vm1726_vm13 = vcmp.gt.f32.partialorder %v1708_v17, 0.0  ;;  %s3007_s6 = scalar_lea.vmem %s2049_s0, 2048  ;;  %p3012_p9 = scmp.lt.s32.totalorder %s2049_s0, %s2049_s0 }
 0x72a   :  { %2816 = vpow2.f32 %v1771_v34  ;;  %v1773_v4 = vmul.f32 1.442695, %v1742_v12  ;;  %v1796_v23 = vsel %vm1716_vm7, %v3496_v22, %v2149_v11  ;;  %v1826_v9 = vpack.c.bf16 %v1798_v25, %v1797_v30  ;;  %p3008_p8 = scmp.ne.s32.totalorder %s2049_s0, %s3007_s6  ;;  %p3013_p10 = scmp.lt.s32.totalorder %s3007_s6, %s3007_s6 }
 0x72b   :  { %2818 = vpow2.f32 %v1767_v21  ;;  %v1825_v29 = vpack.c.bf16 %v1796_v23, %v1795_v44  ;;  %v1769_v35 = vmul.f32 1.442695, %v1740_v27  ;;  %vm1723_vm14 = vcmp.gt.f32.partialorder %v3528_v5, 0.0 }
 0x72c   :  { %v2809_v13 = vpop.eup %2808  ;;  %2820 = vpow2.f32 %v1773_v4  ;;  %vm1724_vm15 = vcmp.gt.f32.partialorder %v1700_v38, 0.0  ;;  %p3014_p11 = por %p3013_p10, %p3012_p9 }
 0x72d   :  { %v2811_v31 = vpop.eup %2810  ;;  %v2154_v33 = vadd.f32 -1.0, %v2809_v13  ;;  %2685 = vmatprep.mubr.bf16.mxu0 %v1825_v29  ;;  %2822 = vpow2.f32 %v1769_v35 }
 0x72e   :  { %v2813_v40 = vpop.eup %2812  ;;  %2686 = vmatmul.mubr.bf16.gmra.mrb[84].mxu0 %v1826_v9  ;;  %v2152_v46 = vadd.f32 -1.0, %v2811_v31  ;;  %p3015_p12 = pnand %p3014_p11, %p3008_p8 }
 0x72f   :  { %v2155_v36 = vadd.f32 -1.0, %v2813_v40  ;;  %v2815_v22 = vpop.eup %2814  ;;  %v1801_v39 = vsel %vm1721_vm8, %v3501_v14, %v2154_v33 }
 0x730   :  { %v2153_v43 = vadd.f32 -1.0, %v2815_v22  ;;  %v1799_v45 = vsel %vm1719_vm10, %v3504_v41, %v2152_v46 }
 0x731   :  { %v1802_v32 = vsel %vm1722_vm9, %v3509_v15, %v2155_v36 }
 0x732   :  { %v1828_v42 = vpack.c.bf16 %v1802_v32, %v1801_v39  ;;  %v1800_v47 = vsel %vm1720_vm11, %v3516_v57, %v2153_v43 }
 0x733   :  { %v1827_v50 = vpack.c.bf16 %v1800_v47, %v1799_v45 }
 0x734   :  { %v2817_v37 = vpop.eup %2816 }
 0x735   :  { %v2819_v48 = vpop.eup %2818  ;;  %v2158_v24 = vadd.f32 -1.0, %v2817_v37  ;;  %2689 = vmatprep.mubr.bf16.mxu1 %v1827_v50 }
 0x736   :  { %v2821_v51 = vpop.eup %2820  ;;  %v2156_v14 = vadd.f32 -1.0, %v2819_v48  ;;  %2690 = vmatmul.mubr.bf16.vlgmr.msra.gmra.mrb[80].mxu1 %v1828_v42 }
 0x737   :  { %v2159_v52 = vadd.f32 -1.0, %v2821_v51  ;;  %v2823_v15 = vpop.eup %2822  ;;  %v1805_v53 = vsel %vm1725_vm12, %v3524_v1, %v2158_v24 }
 0x738   :  { %v2157_v55 = vadd.f32 -1.0, %v2823_v15  ;;  %v1803_v41 = vsel %vm1723_vm14, %v3528_v5, %v2156_v14 }
 0x739   :  { %v1806_v54 = vsel %vm1726_vm13, %v1708_v17, %v2159_v52 }
 0x73a   :  { %v1830_v56 = vpack.c.bf16 %v1806_v54, %v1805_v53  ;;  %v1804_v57 = vsel %vm1724_vm15, %v1700_v38, %v2157_v55 }
 0x73b   :  { %v1829_v58 = vpack.c.bf16 %v1804_v57, %v1803_v41 }
 0x73d   :  { %2693 = vmatprep.mubr.bf16.mxu1 %v1829_v58 }
 0x73e   :  { %2694 = vmatmul.mubr.bf16.gmra.mrb[84].mxu1 %v1830_v56 }
 0x748   :  { %v2619_v60 = vpop.f32.mrb[64].mxu0 }
 0x749   :  { %v1481_v49 = vadd.f32 %v2619_v60, %v2134_v59  ;;  %v1472_v61 = vpop.f32.mrb[65].mxu0 }
 0x74a   :  { %v1473_v62 = vadd.f32 %v2134_v59, %v1472_v61  ;;  %v2620_v63 = vpop.f32.mrb[66].mxu0 }
 0x74b   :  { %2001 = vst [vmem:[#allocation17 + $0x10] sm:$0xff] %v1481_v49  ;;  %v1484_v0 = vadd.f32 %v2620_v63, %v2134_v59  ;;  %v1475_v1 = vpop.f32.mrb[67].mxu0 }
 0x74c   :  { %1999 = vst [vmem:[#allocation17] sm:$0xff] %v1473_v62  ;;  %v1476_v10 = vadd.f32 %v2134_v59, %v1475_v1 }
 0x74d   :  { %2002 = vst [vmem:[#allocation17 + $0x18] sm:$0xff] %v1484_v0 }
 0x74e   :  { %2000 = vst [vmem:[#allocation17 + $0x8] sm:$0xff] %v1476_v10 }
 0x750   :  { %v2623_v2 = vpop.f32.mrb[68].mxu0 }
 0x751   :  { %v1497_v3 = vadd.f32 %v2623_v2, %v2134_v59  ;;  %v1488_v5 = vpop.f32.mrb[69].mxu0 }
 0x752   :  { %v1489_v6 = vadd.f32 %v2134_v59, %v1488_v5  ;;  %v2624_v7 = vpop.f32.mrb[70].mxu0 }
 0x753   :  { %2005 = vst [vmem:[#allocation17 + $0x30] sm:$0xff] %v1497_v3  ;;  %v1500_v8 = vadd.f32 %v2624_v7, %v2134_v59  ;;  %v1491_v16 = vpop.f32.mrb[71].mxu0 }
 0x754   :  { %2003 = vst [vmem:[#allocation17 + $0x20] sm:$0xff] %v1489_v6  ;;  %v1492_v17 = vadd.f32 %v2134_v59, %v1491_v16 }
 0x755   :  { %2006 = vst [vmem:[#allocation17 + $0x38] sm:$0xff] %v1500_v8 }
 0x756   :  { %2004 = vst [vmem:[#allocation17 + $0x28] sm:$0xff] %v1492_v17 }
 0x758   :  { %v2627_v28 = vpop.f32.mrb[72].mxu0 }
 0x759   :  { %v1513_v18 = vadd.f32 %v2627_v28, %v2134_v59  ;;  %v1504_v19 = vpop.f32.mrb[73].mxu0 }
 0x75a   :  { %v1505_v20 = vadd.f32 %v2134_v59, %v1504_v19  ;;  %v2628_v26 = vpop.f32.mrb[74].mxu0 }
 0x75b   :  { %2009 = vst [vmem:[#allocation17 + $0x50] sm:$0xff] %v1513_v18  ;;  %v1516_v11 = vadd.f32 %v2628_v26, %v2134_v59  ;;  %v1507_v34 = vpop.f32.mrb[75].mxu0 }
 0x75c   :  { %2007 = vst [vmem:[#allocation17 + $0x40] sm:$0xff] %v1505_v20  ;;  %v1508_v12 = vadd.f32 %v2134_v59, %v1507_v34 }
 0x75d   :  { %2010 = vst [vmem:[#allocation17 + $0x58] sm:$0xff] %v1516_v11 }
 0x75e   :  { %2008 = vst [vmem:[#allocation17 + $0x48] sm:$0xff] %v1508_v12 }
 0x760   :  { %v2631_v21 = vpop.f32.mrb[76].mxu0 }
 0x761   :  { %v1529_v38 = vadd.f32 %v2631_v21, %v2134_v59  ;;  %v1520_v44 = vpop.f32.mrb[77].mxu0 }
 0x762   :  { %v1521_v4 = vadd.f32 %v2134_v59, %v1520_v44  ;;  %v2632_v23 = vpop.f32.mrb[78].mxu0 }
 0x763   :  { %2013 = vst [vmem:[#allocation17 + $0x70] sm:$0xff] %v1529_v38  ;;  %v1532_v25 = vadd.f32 %v2632_v23, %v2134_v59  ;;  %v1523_v27 = vpop.f32.mrb[79].mxu0 }
 0x764   :  { %2011 = vst [vmem:[#allocation17 + $0x60] sm:$0xff] %v1521_v4  ;;  %v1524_v29 = vadd.f32 %v2134_v59, %v1523_v27 }
 0x765   :  { %2014 = vst [vmem:[#allocation17 + $0x78] sm:$0xff] %v1532_v25 }
 0x766   :  { %2012 = vst [vmem:[#allocation17 + $0x68] sm:$0xff] %v1524_v29 }
 0x767   :  { %3018 = shalt.err (!%p3015_p12)
}
 0x768   :  { %s3019_s25 = scalar_lea.hbm %s3623_s15, 2048 }
 0x769   :  { %p3020_p13 = scmp.ne.s32.totalorder %s3623_s15, %s3019_s25  ;;  %p3023_p0 = scmp.lt.u32.totalorder %s3019_s25, %s3623_s15 }
 0x76b   :  { %p3025_p1 = pnand %p3023_p0, %p3020_p13 }
 0x76d   :  { %3028 = shalt.err (!%p3025_p1)
}
 0x76e   :  { %s3099_s29 = smov 128   ;;  %s3100_s21 = smov 8  }
 0x76f   :  { %2054 = dma.vmem_to_hbm [thread:$0]  %s2049_s0, 2048, %s3623_s15, [#allocation18], %s3099_s29, %s3099_s29, %s3100_s21  }
 0x770   :  { %s3029_s28 = scalar_lea.vmem %s2037_s22, 2048  ;;  %p3034_p3 = scmp.lt.s32.totalorder %s2037_s22, %s2037_s22 }
 0x771   :  { %p3030_p2 = scmp.ne.s32.totalorder %s2037_s22, %s3029_s28  ;;  %p3035_p4 = scmp.lt.s32.totalorder %s3029_s28, %s3029_s28 }
 0x773   :  { %p3036_p5 = por %p3035_p4, %p3034_p3 }
 0x775   :  { %p3037_p6 = pnand %p3036_p5, %p3030_p2 }
 0x777   :  { %3040 = shalt.err (!%p3037_p6)
}
 0x778   :  { %s3041_s3 = scalar_lea.hbm %s3622_s14, 2048 }
 0x779   :  { %p3042_p7 = scmp.ne.s32.totalorder %s3622_s14, %s3041_s3  ;;  %p3045_p8 = scmp.lt.u32.totalorder %s3041_s3, %s3622_s14 }
 0x77b   :  { %p3047_p9 = pnand %p3045_p8, %p3042_p7 }
 0x77d   :  { %3050 = shalt.err (!%p3047_p9)
}
 0x77e   :  { %2042 = dma.vmem_to_hbm [thread:$0]  %s2037_s22, 2048, %s3622_s14, [#allocation4], %s3099_s29, %s3099_s29, %s3100_s21  }
 0x77f   :  { %v2160_v30 = vld [vmem:[%s3621_s13] ss:$0 sm:$0xff]  ;;  %s3101_s13 = smov [#allocation19]  }
 0x780   :  { %s2060_s14 = sshll.u32 %s3101_s13, 4  ;;  %s2061_s14 = int_to_ptr.vmem [resolvable:$true] %s2060_s14 }
 0x781   :  { %s3051_s9 = scalar_lea.vmem %s2061_s14, 2048  ;;  %p3056_p11 = scmp.lt.s32.totalorder %s2061_s14, %s2061_s14 }
 0x782   :  { %p3052_p10 = scmp.ne.s32.totalorder %s2061_s14, %s3051_s9  ;;  %p3057_p12 = scmp.lt.s32.totalorder %s3051_s9, %s3051_s9 }
 0x784   :  { %p3058_p13 = por %p3057_p12, %p3056_p11 }
 0x786   :  { %p3059_p0 = pnand %p3058_p13, %p3052_p10 }
 0x7f9   :  { %v2683_v13 = vpop.f32.mrb[80].mxu0 }
 0x7fa   :  { %v1929_v9 = vadd.f32 %v2683_v13, %v2160_v30  ;;  %v1920_v31 = vpop.f32.mrb[81].mxu0 }
 0x7fb   :  { %v1921_v33 = vadd.f32 %v2160_v30, %v1920_v31  ;;  %v2684_v35 = vpop.f32.mrb[82].mxu0 }
 0x7fc   :  { %2017 = vst [vmem:[#allocation19 + $0x10] sm:$0xff] %v1929_v9  ;;  %v1932_v40 = vadd.f32 %v2684_v35, %v2160_v30  ;;  %v1923_v36 = vpop.f32.mrb[83].mxu0 }
 0x7fd   :  { %2015 = vst [vmem:[#allocation19] sm:$0xff] %v1921_v33  ;;  %v1924_v46 = vadd.f32 %v2160_v30, %v1923_v36 }
 0x7fe   :  { %2018 = vst [vmem:[#allocation19 + $0x18] sm:$0xff] %v1932_v40 }
 0x7ff   :  { %2016 = vst [vmem:[#allocation19 + $0x8] sm:$0xff] %v1924_v46 }
 0x801   :  { %v2687_v22 = vpop.f32.mrb[84].mxu0 }
 0x802   :  { %v1945_v39 = vadd.f32 %v2687_v22, %v2160_v30  ;;  %v1936_v32 = vpop.f32.mrb[85].mxu0 }
 0x803   :  { %v1937_v42 = vadd.f32 %v2160_v30, %v1936_v32  ;;  %v2688_v43 = vpop.f32.mrb[86].mxu0 }
 0x804   :  { %2021 = vst [vmem:[#allocation19 + $0x30] sm:$0xff] %v1945_v39  ;;  %v1948_v37 = vadd.f32 %v2688_v43, %v2160_v30  ;;  %v1939_v45 = vpop.f32.mrb[87].mxu0 }
 0x805   :  { %2019 = vst [vmem:[#allocation19 + $0x20] sm:$0xff] %v1937_v42  ;;  %v1940_v47 = vadd.f32 %v2160_v30, %v1939_v45 }
 0x806   :  { %2022 = vst [vmem:[#allocation19 + $0x38] sm:$0xff] %v1948_v37 }
 0x807   :  { %2020 = vst [vmem:[#allocation19 + $0x28] sm:$0xff] %v1940_v47 }
 0x809   :  { %v2691_v48 = vpop.f32.mrb[80].mxu1 }
 0x80a   :  { %v1961_v24 = vadd.f32 %v2691_v48, %v2160_v30  ;;  %v1952_v50 = vpop.f32.mrb[81].mxu1 }
 0x80b   :  { %v1953_v51 = vadd.f32 %v2160_v30, %v1952_v50  ;;  %v2692_v52 = vpop.f32.mrb[82].mxu1 }
 0x80c   :  { %2025 = vst [vmem:[#allocation19 + $0x50] sm:$0xff] %v1961_v24  ;;  %v1964_v14 = vadd.f32 %v2692_v52, %v2160_v30  ;;  %v1955_v15 = vpop.f32.mrb[83].mxu1 }
 0x80d   :  { %2023 = vst [vmem:[#allocation19 + $0x40] sm:$0xff] %v1953_v51  ;;  %v1956_v53 = vadd.f32 %v2160_v30, %v1955_v15 }
 0x80e   :  { %2026 = vst [vmem:[#allocation19 + $0x58] sm:$0xff] %v1964_v14 }
 0x80f   :  { %2024 = vst [vmem:[#allocation19 + $0x48] sm:$0xff] %v1956_v53 }
 0x811   :  { %v2695_v54 = vpop.f32.mrb[84].mxu1 }
 0x812   :  { %v1977_v55 = vadd.f32 %v2695_v54, %v2160_v30  ;;  %v1968_v56 = vpop.f32.mrb[85].mxu1 }
 0x813   :  { %v1969_v41 = vadd.f32 %v2160_v30, %v1968_v56  ;;  %v2696_v57 = vpop.f32.mrb[86].mxu1 }
 0x814   :  { %2029 = vst [vmem:[#allocation19 + $0x70] sm:$0xff] %v1977_v55  ;;  %v1980_v58 = vadd.f32 %v2696_v57, %v2160_v30  ;;  %v1971_v59 = vpop.f32.mrb[87].mxu1 }
 0x815   :  { %2027 = vst [vmem:[#allocation19 + $0x60] sm:$0xff] %v1969_v41  ;;  %v1972_v60 = vadd.f32 %v2160_v30, %v1971_v59 }
 0x816   :  { %2030 = vst [vmem:[#allocation19 + $0x78] sm:$0xff] %v1980_v58 }
 0x817   :  { %2028 = vst [vmem:[#allocation19 + $0x68] sm:$0xff] %v1972_v60 }
 0x818   :  { %3062 = shalt.err (!%p3059_p0)
}
 0x819   :  { %s3063_s22 = scalar_lea.hbm %s3624_s16, 2048 }
 0x81a   :  { %p3064_p1 = scmp.ne.s32.totalorder %s3624_s16, %s3063_s22  ;;  %p3067_p2 = scmp.lt.u32.totalorder %s3063_s22, %s3624_s16 }
 0x81c   :  { %p3069_p3 = pnand %p3067_p2, %p3064_p1 }
 0x81e   :  { %3072 = shalt.err (!%p3069_p3)
}
 0x81f   :  { %2066 = dma.vmem_to_hbm [thread:$0]  %s2061_s14, 2048, %s3624_s16, [#allocation18], %s3099_s29, %s3099_s29, %s3100_s21  }
 0x820   :  { %3083 = dma.done.wait [#allocation4], 2048  }
 0x821   :  { %3084 = vsyncadd [#allocation4], 4294965248 }
 0x822   :  { %3085 = dma.done.wait [#allocation18], 4096  }
 0x823   :  { %3086 = vsyncadd [#allocation18], 4294963200 }
 0x824   :  { %2076 = vsyncpa [#allocation3], 1 }
 0x825   :  { %2077 = vsyncpa [#allocation6], 1 }
 0x826   :  { %2078 = vsyncpa [#allocation9], 1 }
 0x827   :  { %2079 = vsyncpa [#allocation12], 1 }
 0x828   :  { %2080 = vsyncpa [#allocation15], 1 }
 0x829   :  { %2081 = vsyncpa [#allocation4], 1 }
 0x82a   :  { %2082 = vsyncpa [#allocation18], 1 }

</bundles_post_ra>
